<compile_context>
chip_gen: v6e
topology: v6e:2x2x1
jax: 0.10.0
libtpu: 0.0.40
codegen_flags: <defaults>
</compile_context>

<pallas_src>
import functools

import jax
import jax.numpy as jnp
import numpy as np
from jax.experimental import pallas as pl
from jax.experimental.pallas import tpu as pltpu


def two_region_lstm_kernel(
    # inputs (sequences already time-major + flattened to (L*B, feat))
    x1_ref, x2_ref, h10_ref, c10_ref, h20_ref, c20_ref,
    wih1_ref, whh1_ref, b1_ref,
    wih2a_ref, wih2b_ref, whh2_ref, b2_ref,
    wl1_ref, bl1_ref, wl2_ref, bl2_ref,
    # outputs
    y1_ref, out2_ref, pol_ref, h1f_ref, c1f_ref, h2f_ref, c2f_ref,
    # VMEM scratch
    x1p_ref, x2p_ref, h1seq_ref, h2seq_ref,
    *, seq_len, batch, is_iti):
  f32 = jnp.float32
  B = batch
  H1 = h10_ref.shape[-1]
  H2 = h20_ref.shape[-1]

  # ---- prologue: batched (non-recurrent) input projections ------------------
  # One well-shaped (L*B, D) x (D, 4H) matmul per region instead of L tiny
  # per-step matmuls on the serial critical path; biases folded in here too.
  x1p_ref[...] = (jnp.dot(x1_ref[...], wih1_ref[...],
                          preferred_element_type=f32) + b1_ref[...])
  x2p_ref[...] = (jnp.dot(x2_ref[...], wih2a_ref[...],
                          preferred_element_type=f32) + b2_ref[...])

  whh1 = whh1_ref[...]
  wih2b = wih2b_ref[...]
  whh2 = whh2_ref[...]

  def lstm_gates(g, c_prev, H):
    # One full-width sigmoid over all four gates + one tanh on the cell gate
    # slice (+ one tanh on the new cell): 3 EUP pushes per region per step.
    s = jax.nn.sigmoid(g)
    c_new = s[:, H:2 * H] * c_prev + s[:, 0:H] * jnp.tanh(g[:, 2 * H:3 * H])
    h_new = s[:, 3 * H:4 * H] * jnp.tanh(c_new)
    return h_new, c_new

  def step(k, h1, c1, h2, c2):
    rows = pl.ds(k * B, B)
    # region 1 recurrence (input projection already in x1p_ref)
    g1 = x1p_ref[rows, :] + jnp.dot(h1, whh1, preferred_element_type=f32)
    h1n, c1n = lstm_gates(g1, c1, H1)
    # region 2 recurrence, consuming h1n directly (fused loops, split matmul
    # over the concat(inputs[1], h1_seq) input — no explicit concat)
    g2 = (x2p_ref[rows, :]
          + jnp.dot(h1n, wih2b, preferred_element_type=f32)
          + jnp.dot(h2, whh2, preferred_element_type=f32))
    h2n, c2n = lstm_gates(g2, c2, H2)
    # only the hidden sequences are needed after the loop (heads are batched)
    h1seq_ref[rows, :] = h1n
    h2seq_ref[rows, :] = h2n
    return h1n, c1n, h2n, c2n

  carry = (h10_ref[...], c10_ref[...], h20_ref[...], c20_ref[...])
  if seq_len <= 32:
    # static unroll: constant ref offsets, full scheduler visibility
    for k in range(seq_len):
      carry = step(k, *carry)
  else:
    carry = jax.lax.fori_loop(0, seq_len, lambda k, c: step(k, *c), carry)
  h1_last, c1_last, h2_last, c2_last = carry
  h1f_ref[...] = h1_last
  c1f_ref[...] = c1_last
  h2f_ref[...] = h2_last
  c2f_ref[...] = c2_last

  # ---- epilogue: batched linear heads + masked softmax ----------------------
  y1_ref[...] = (jnp.dot(h1seq_ref[...], wl1_ref[...],
                         preferred_element_type=f32) + bl1_ref[...])
  o2 = (jnp.dot(h2seq_ref[...], wl2_ref[...],
                preferred_element_type=f32) + bl2_ref[...])
  out2_ref[...] = o2

  # policy head: mask restricted actions, softmax over 3 logits, batched
  pi = o2[:, 0:3]
  lane = jax.lax.broadcasted_iota(jnp.int32, pi.shape, 1)
  if is_iti:
    pi = jnp.where(lane < 2, -1000.0, pi)
  else:
    pi = jnp.where(lane == 2, -1000.0, pi)
  m = jnp.max(pi, axis=1, keepdims=True)
  e = jnp.exp(pi - m)
  denom = jnp.sum(e, axis=1, keepdims=True)
  # NOTE: pl.reciprocal(approx=True) would be "free" on the EUP but risks the
  # 2e-3 policy tolerance; this runs once per call, so keep exact division.
  pol_ref[...] = e / denom


def init_params(key, din=(6, 2), num_hiddens=(32, 32), dout=(6, 5)):
  """Deterministic synthetic parameters (PyTorch-style uniform init)."""
  D1, D2 = din
  H1, H2 = num_hiddens
  DO1, DO2 = dout
  keys = jax.random.split(key, 11)

  def u(k, shape, bound):
    return jax.random.uniform(k, shape, jnp.float32, -bound, bound)

  b1 = 1.0 / np.sqrt(H1)
  b2 = 1.0 / np.sqrt(H2)
  return dict(
      wih1=u(keys[0], (D1, 4 * H1), b1),
      whh1=u(keys[1], (H1, 4 * H1), b1),
      b1=u(keys[2], (1, 4 * H1), b1),        # combined b_ih + b_hh
      wih2a=u(keys[3], (D2, 4 * H2), b2),    # rows of W_ih2 hitting inputs[1]
      wih2b=u(keys[4], (H1, 4 * H2), b2),    # rows of W_ih2 hitting h1_seq
      whh2=u(keys[5], (H2, 4 * H2), b2),
      b2=u(keys[6], (1, 4 * H2), b2),
      wl1=u(keys[7], (H1, DO1), b1),
      bl1=u(keys[8], (1, DO1), b1),
      wl2=u(keys[9], (H2, DO2), b2),
      bl2=u(keys[10], (1, DO2), b2),
  )


def forward(params, inputs, state, is_iti=False):
  """Mirrors RNNModel_multiregion.forward (LSTM, dropout=0, snr=0)."""
  x1, x2 = inputs                              # (B, L, D1), (B, L, D2)
  (h1, c1), (h2, c2) = state                   # each (1, B, H)
  B, L, D1 = x1.shape
  D2 = x2.shape[-1]
  H1 = h1.shape[-1]
  H2 = h2.shape[-1]
  DO1 = params["wl1"].shape[1]
  DO2 = params["wl2"].shape[1]

  # time-major + flattened: row (k*B + b) holds (time k, batch b)
  x1_f = jnp.transpose(x1, (1, 0, 2)).reshape(L * B, D1)
  x2_f = jnp.transpose(x2, (1, 0, 2)).reshape(L * B, D2)

  kernel = functools.partial(two_region_lstm_kernel, seq_len=L, batch=B,
                             is_iti=bool(is_iti))
  vmem = pl.BlockSpec(memory_space=pltpu.MemorySpace.VMEM)
  out_shape = (
      jax.ShapeDtypeStruct((L * B, DO1), jnp.float32),   # Y1 (time-major flat)
      jax.ShapeDtypeStruct((L * B, DO2), jnp.float32),   # output2
      jax.ShapeDtypeStruct((L * B, 3), jnp.float32),     # policy
      jax.ShapeDtypeStruct((B, H1), jnp.float32),        # final h1
      jax.ShapeDtypeStruct((B, H1), jnp.float32),        # final c1
      jax.ShapeDtypeStruct((B, H2), jnp.float32),        # final h2
      jax.ShapeDtypeStruct((B, H2), jnp.float32),        # final c2
  )
  scratch = [
      pltpu.VMEM((L * B, 4 * H1), jnp.float32),   # x1 @ W_ih1 + b1
      pltpu.VMEM((L * B, 4 * H2), jnp.float32),   # x2 @ W_ih2[:D2] + b2
      pltpu.VMEM((L * B, H1), jnp.float32),       # region-1 hidden sequence
      pltpu.VMEM((L * B, H2), jnp.float32),       # region-2 hidden sequence
  ]
  (y1_f, out2_f, pol_f,
   h1_last, c1_last, h2_last, c2_last) = pl.pallas_call(
      kernel,
      out_shape=out_shape,
      in_specs=[vmem] * 17,
      out_specs=tuple([vmem] * 7),
      scratch_shapes=scratch,
  )(x1_f, x2_f, h1[0], c1[0], h2[0], c2[0],
    params["wih1"], params["whh1"], params["b1"],
    params["wih2a"], params["wih2b"], params["whh2"], params["b2"],
    params["wl1"], params["bl1"], params["wl2"], params["bl2"])

  # time-major flat -> batch-first flat (matches torch's .reshape(-1, d))
  def to_batch_major(a, d):
    return jnp.transpose(a.reshape(L, B, d), (1, 0, 2)).reshape(-1, d)

  Y1 = to_batch_major(y1_f, DO1)
  out2 = to_batch_major(out2_f, DO2)
  policy = to_batch_major(pol_f, 3)

  pred_activations = Y1[:, 0:5]
  output_supervised_ofc = Y1[:, 5:6]
  output_supervised_dms = out2[:, 4:]
  output_supervised = jnp.concatenate(
      [output_supervised_dms, output_supervised_ofc], axis=1)
  output_value = out2[:, 3]

  state1 = (h1_last[:, None, :], c1_last[:, None, :])    # (B, 1, H1) each
  state2 = (h2_last[None, :, :], c2_last[None, :, :])    # (1, B, H2) each
  return {"policy": policy,
          "value": output_value,
          "state": [state1, state2],
          "activations": pred_activations,
          "pred_supervised": output_supervised}


def ref_forward(params, inputs, state, is_iti=False):
  """Pure-JAX reference with identical math (for correctness check)."""
  hp = jax.lax.Precision.HIGHEST
  x1, x2 = inputs
  (h1, c1), (h2, c2) = state
  h1, c1, h2, c2 = h1[0], c1[0], h2[0], c2[0]
  B, L, _ = x1.shape
  H1 = h1.shape[-1]
  H2 = h2.shape[-1]

  def step(x, h, c, wih, whh, b, H):
    g = jnp.dot(x, wih, precision=hp) + jnp.dot(h, whh, precision=hp) + b
    i = jax.nn.sigmoid(g[:, :H])
    f = jax.nn.sigmoid(g[:, H:2 * H])
    gg = jnp.tanh(g[:, 2 * H:3 * H])
    o = jax.nn.sigmoid(g[:, 3 * H:])
    cn = f * c + i * gg
    return o * jnp.tanh(cn), cn

  hh, cc = h1, c1
  h1s, y1s = [], []
  for k in range(L):
    hh, cc = step(x1[:, k, :], hh, cc, params["wih1"], params["whh1"],
                  params["b1"], H1)
    h1s.append(hh)
    y1s.append(jnp.dot(hh, params["wl1"], precision=hp) + params["bl1"])
  h1seq = jnp.stack(h1s, axis=1)
  Y1 = jnp.stack(y1s, axis=1).reshape(-1, params["wl1"].shape[1])

  wih2 = jnp.concatenate([params["wih2a"], params["wih2b"]], axis=0)
  hh, cc = h2, c2
  outs = []
  for k in range(L):
    xin = jnp.concatenate([x2[:, k, :], h1seq[:, k, :]], axis=1)
    hh, cc = step(xin, hh, cc, wih2, params["whh2"], params["b2"], H2)
    outs.append(jnp.dot(hh, params["wl2"], precision=hp) + params["bl2"])
  out2 = jnp.stack(outs, axis=1).reshape(-1, params["wl2"].shape[1])

  pi = out2[:, :3]
  lane = jnp.arange(3)[None, :]
  pi = jnp.where(lane < 2, -1000.0, pi) if is_iti else jnp.where(
      lane == 2, -1000.0, pi)
  return {"policy": jax.nn.softmax(pi, axis=1),
          "value": out2[:, 3],
          "activations": Y1[:, :5],
          "pred_supervised": jnp.concatenate([out2[:, 4:], Y1[:, 5:6]],
                                             axis=1)}


if __name__ == "__main__":
  key = jax.random.PRNGKey(0)
  kp, kx, ks = jax.random.split(key, 3)

  B, L = 2, 8
  din = (6, 2)
  num_hiddens = (32, 32)
  dout = (6, 5)   # region1 head needs >=6 cols, region2 head needs >=5

  params = init_params(kp, din, num_hiddens, dout)

  # parseiputs(inputcase=11): inp1 = inp, inp2 = inp[:, :, 0:2]
  inp = jax.random.normal(kx, (B, L, din[0]), jnp.float32)
  inputs = [inp, inp[:, :, 0:2]]

  sk = jax.random.split(ks, 4)
  state = [
      (jax.random.uniform(sk[0], (1, B, num_hiddens[0]), jnp.float32),
       jax.random.uniform(sk[1], (1, B, num_hiddens[0]), jnp.float32)),
      (jax.random.uniform(sk[2], (1, B, num_hiddens[1]), jnp.float32),
       jax.random.uniform(sk[3], (1, B, num_hiddens[1]), jnp.float32)),
  ]

  out = forward(params, inputs, state, is_iti=False)
  jax.block_until_ready(out)

  ref = ref_forward(params, inputs, state, is_iti=False)
  for name in ("policy", "value", "activations", "pred_supervised"):
    np.testing.assert_allclose(np.asarray(out[name]), np.asarray(ref[name]),
                               rtol=2e-3, atol=2e-3)

  print("KERNEL_OK")
</pallas_src>

<mosaic_0001>
module attributes {stable_mosaic.version = 11 : i64} {
  func.func @two_region_lstm_kernel(%arg0: memref<16x6xf32, #tpu.memory_space<vmem>>, %arg1: memref<16x2xf32, #tpu.memory_space<vmem>>, %arg2: memref<2x32xf32, #tpu.memory_space<vmem>>, %arg3: memref<2x32xf32, #tpu.memory_space<vmem>>, %arg4: memref<2x32xf32, #tpu.memory_space<vmem>>, %arg5: memref<2x32xf32, #tpu.memory_space<vmem>>, %arg6: memref<6x128xf32, #tpu.memory_space<vmem>>, %arg7: memref<32x128xf32, #tpu.memory_space<vmem>>, %arg8: memref<1x128xf32, #tpu.memory_space<vmem>>, %arg9: memref<2x128xf32, #tpu.memory_space<vmem>>, %arg10: memref<32x128xf32, #tpu.memory_space<vmem>>, %arg11: memref<32x128xf32, #tpu.memory_space<vmem>>, %arg12: memref<1x128xf32, #tpu.memory_space<vmem>>, %arg13: memref<32x6xf32, #tpu.memory_space<vmem>>, %arg14: memref<1x6xf32, #tpu.memory_space<vmem>>, %arg15: memref<32x5xf32, #tpu.memory_space<vmem>>, %arg16: memref<1x5xf32, #tpu.memory_space<vmem>>, %arg17: memref<16x6xf32, #tpu.memory_space<vmem>>, %arg18: memref<16x5xf32, #tpu.memory_space<vmem>>, %arg19: memref<16x3xf32, #tpu.memory_space<vmem>>, %arg20: memref<2x32xf32, #tpu.memory_space<vmem>>, %arg21: memref<2x32xf32, #tpu.memory_space<vmem>>, %arg22: memref<2x32xf32, #tpu.memory_space<vmem>>, %arg23: memref<2x32xf32, #tpu.memory_space<vmem>>, %arg24: memref<16x128xf32, #tpu.memory_space<vmem>>, %arg25: memref<16x128xf32, #tpu.memory_space<vmem>>, %arg26: memref<16x32xf32, #tpu.memory_space<vmem>>, %arg27: memref<16x32xf32, #tpu.memory_space<vmem>>) attributes {dimension_semantics = [], scalar_prefetch = 0 : i64, scratch_operands = 4 : i64, tpu.core_type = #tpu.core_type<tc>} {
    %c0 = arith.constant 0 : index
    %c0_0 = arith.constant 0 : index
    %0 = vector.load %arg0[%c0, %c0_0] : memref<16x6xf32, #tpu.memory_space<vmem>>, vector<16x6xf32>
    %c0_1 = arith.constant 0 : index
    %c0_2 = arith.constant 0 : index
    %1 = vector.load %arg6[%c0_1, %c0_2] : memref<6x128xf32, #tpu.memory_space<vmem>>, vector<6x128xf32>
    %cst = arith.constant dense<0.000000e+00> : vector<16x128xf32>
    %2 = tpu.matmul %0, %1, %cst {dimension_numbers = #tpu.dot_dimension_numbers<[1], [0], [0], [1], [0, 0, 1, 1], [], []>} : vector<16x6xf32>, vector<6x128xf32>, vector<16x128xf32> -> vector<16x128xf32>
    %c0_3 = arith.constant 0 : index
    %c0_4 = arith.constant 0 : index
    %3 = vector.load %arg8[%c0_3, %c0_4] : memref<1x128xf32, #tpu.memory_space<vmem>>, vector<1x128xf32>
    %4 = vector.broadcast %3 : vector<1x128xf32> to vector<16x128xf32>
    %5 = arith.addf %2, %4 : vector<16x128xf32>
    %c0_5 = arith.constant 0 : index
    %c0_6 = arith.constant 0 : index
    %6 = vector.load %arg24[%c0_5, %c0_6] : memref<16x128xf32, #tpu.memory_space<vmem>>, vector<16x128xf32>
    tpu.vector_store %arg24[%c0_5, %c0_6], %5 {strides = array<i32>} : memref<16x128xf32, #tpu.memory_space<vmem>>, vector<16x128xf32>,
    %c0_7 = arith.constant 0 : index
    %c0_8 = arith.constant 0 : index
    %7 = vector.load %arg1[%c0_7, %c0_8] : memref<16x2xf32, #tpu.memory_space<vmem>>, vector<16x2xf32>
    %c0_9 = arith.constant 0 : index
    %c0_10 = arith.constant 0 : index
    %8 = vector.load %arg9[%c0_9, %c0_10] : memref<2x128xf32, #tpu.memory_space<vmem>>, vector<2x128xf32>
    %cst_11 = arith.constant dense<0.000000e+00> : vector<16x128xf32>
    %9 = tpu.matmul %7, %8, %cst_11 {dimension_numbers = #tpu.dot_dimension_numbers<[1], [0], [0], [1], [0, 0, 1, 1], [], []>} : vector<16x2xf32>, vector<2x128xf32>, vector<16x128xf32> -> vector<16x128xf32>
    %c0_12 = arith.constant 0 : index
    %c0_13 = arith.constant 0 : index
    %10 = vector.load %arg12[%c0_12, %c0_13] : memref<1x128xf32, #tpu.memory_space<vmem>>, vector<1x128xf32>
    %11 = vector.broadcast %10 : vector<1x128xf32> to vector<16x128xf32>
    %12 = arith.addf %9, %11 : vector<16x128xf32>
    %c0_14 = arith.constant 0 : index
    %c0_15 = arith.constant 0 : index
    %13 = vector.load %arg25[%c0_14, %c0_15] : memref<16x128xf32, #tpu.memory_space<vmem>>, vector<16x128xf32>
    tpu.vector_store %arg25[%c0_14, %c0_15], %12 {strides = array<i32>} : memref<16x128xf32, #tpu.memory_space<vmem>>, vector<16x128xf32>,
    %c0_16 = arith.constant 0 : index
    %c0_17 = arith.constant 0 : index
    %14 = vector.load %arg7[%c0_16, %c0_17] : memref<32x128xf32, #tpu.memory_space<vmem>>, vector<32x128xf32>
    %c0_18 = arith.constant 0 : index
    %c0_19 = arith.constant 0 : index
    %15 = vector.load %arg10[%c0_18, %c0_19] : memref<32x128xf32, #tpu.memory_space<vmem>>, vector<32x128xf32>
    %c0_20 = arith.constant 0 : index
    %c0_21 = arith.constant 0 : index
    %16 = vector.load %arg11[%c0_20, %c0_21] : memref<32x128xf32, #tpu.memory_space<vmem>>, vector<32x128xf32>
    %c0_22 = arith.constant 0 : index
    %c0_23 = arith.constant 0 : index
    %17 = vector.load %arg2[%c0_22, %c0_23] : memref<2x32xf32, #tpu.memory_space<vmem>>, vector<2x32xf32>
    %c0_24 = arith.constant 0 : index
    %c0_25 = arith.constant 0 : index
    %18 = vector.load %arg3[%c0_24, %c0_25] : memref<2x32xf32, #tpu.memory_space<vmem>>, vector<2x32xf32>
    %c0_26 = arith.constant 0 : index
    %c0_27 = arith.constant 0 : index
    %19 = vector.load %arg4[%c0_26, %c0_27] : memref<2x32xf32, #tpu.memory_space<vmem>>, vector<2x32xf32>
    %c0_28 = arith.constant 0 : index
    %c0_29 = arith.constant 0 : index
    %20 = vector.load %arg5[%c0_28, %c0_29] : memref<2x32xf32, #tpu.memory_space<vmem>>, vector<2x32xf32>
    %c0_30 = arith.constant 0 : index
    %c0_31 = arith.constant 0 : index
    %21 = vector.load %arg24[%c0_30, %c0_31] : memref<16x128xf32, #tpu.memory_space<vmem>>, vector<2x128xf32>
    %cst_32 = arith.constant dense<0.000000e+00> : vector<2x128xf32>
    %22 = tpu.matmul %17, %14, %cst_32 {dimension_numbers = #tpu.dot_dimension_numbers<[1], [0], [0], [1], [0, 0, 1, 1], [], []>} : vector<2x32xf32>, vector<32x128xf32>, vector<2x128xf32> -> vector<2x128xf32>
    %23 = arith.addf %21, %22 : vector<2x128xf32>
    %24 = arith.negf %23 : vector<2x128xf32>
    %25 = math.exp %24 : vector<2x128xf32>
    %cst_33 = arith.constant 1.000000e+00 : f32
    %26 = vector.broadcast %cst_33 : f32 to vector<2x128xf32>
    %27 = arith.addf %26, %25 : vector<2x128xf32>
    %28 = arith.divf %26, %27 : vector<2x128xf32>
    %29 = vector.extract_strided_slice %28 {offsets = [0, 32], sizes = [2, 32], strides = [1, 1]} : vector<2x128xf32> to vector<2x32xf32>
    %30 = arith.mulf %29, %18 : vector<2x32xf32>
    %31 = vector.extract_strided_slice %28 {offsets = [0, 0], sizes = [2, 32], strides = [1, 1]} : vector<2x128xf32> to vector<2x32xf32>
    %32 = vector.extract_strided_slice %23 {offsets = [0, 64], sizes = [2, 32], strides = [1, 1]} : vector<2x128xf32> to vector<2x32xf32>
    %33 = math.tanh %32 : vector<2x32xf32>
    %34 = arith.mulf %31, %33 : vector<2x32xf32>
    %35 = arith.addf %30, %34 : vector<2x32xf32>
    %36 = vector.extract_strided_slice %28 {offsets = [0, 96], sizes = [2, 32], strides = [1, 1]} : vector<2x128xf32> to vector<2x32xf32>
    %37 = math.tanh %35 : vector<2x32xf32>
    %38 = arith.mulf %36, %37 : vector<2x32xf32>
    %c0_34 = arith.constant 0 : index
    %c0_35 = arith.constant 0 : index
    %39 = vector.load %arg25[%c0_34, %c0_35] : memref<16x128xf32, #tpu.memory_space<vmem>>, vector<2x128xf32>
    %cst_36 = arith.constant dense<0.000000e+00> : vector<2x128xf32>
    %40 = tpu.matmul %38, %15, %cst_36 {dimension_numbers = #tpu.dot_dimension_numbers<[1], [0], [0], [1], [0, 0, 1, 1], [], []>} : vector<2x32xf32>, vector<32x128xf32>, vector<2x128xf32> -> vector<2x128xf32>
    %41 = arith.addf %39, %40 : vector<2x128xf32>
    %cst_37 = arith.constant dense<0.000000e+00> : vector<2x128xf32>
    %42 = tpu.matmul %19, %16, %cst_37 {dimension_numbers = #tpu.dot_dimension_numbers<[1], [0], [0], [1], [0, 0, 1, 1], [], []>} : vector<2x32xf32>, vector<32x128xf32>, vector<2x128xf32> -> vector<2x128xf32>
    %43 = arith.addf %41, %42 : vector<2x128xf32>
    %44 = arith.negf %43 : vector<2x128xf32>
    %45 = math.exp %44 : vector<2x128xf32>
    %cst_38 = arith.constant 1.000000e+00 : f32
    %46 = vector.broadcast %cst_38 : f32 to vector<2x128xf32>
    %47 = arith.addf %46, %45 : vector<2x128xf32>
    %48 = arith.divf %46, %47 : vector<2x128xf32>
    %49 = vector.extract_strided_slice %48 {offsets = [0, 32], sizes = [2, 32], strides = [1, 1]} : vector<2x128xf32> to vector<2x32xf32>
    %50 = arith.mulf %49, %20 : vector<2x32xf32>
    %51 = vector.extract_strided_slice %48 {offsets = [0, 0], sizes = [2, 32], strides = [1, 1]} : vector<2x128xf32> to vector<2x32xf32>
    %52 = vector.extract_strided_slice %43 {offsets = [0, 64], sizes = [2, 32], strides = [1, 1]} : vector<2x128xf32> to vector<2x32xf32>
    %53 = math.tanh %52 : vector<2x32xf32>
    %54 = arith.mulf %51, %53 : vector<2x32xf32>
    %55 = arith.addf %50, %54 : vector<2x32xf32>
    %56 = vector.extract_strided_slice %48 {offsets = [0, 96], sizes = [2, 32], strides = [1, 1]} : vector<2x128xf32> to vector<2x32xf32>
    %57 = math.tanh %55 : vector<2x32xf32>
    %58 = arith.mulf %56, %57 : vector<2x32xf32>
    %c0_39 = arith.constant 0 : index
    %c0_40 = arith.constant 0 : index
    %59 = vector.load %arg26[%c0_39, %c0_40] : memref<16x32xf32, #tpu.memory_space<vmem>>, vector<2x32xf32>
    tpu.vector_store %arg26[%c0_39, %c0_40], %38 {strides = array<i32>} : memref<16x32xf32, #tpu.memory_space<vmem>>, vector<2x32xf32>,
    %c0_41 = arith.constant 0 : index
    %c0_42 = arith.constant 0 : index
    %60 = vector.load %arg27[%c0_41, %c0_42] : memref<16x32xf32, #tpu.memory_space<vmem>>, vector<2x32xf32>
    tpu.vector_store %arg27[%c0_41, %c0_42], %58 {strides = array<i32>} : memref<16x32xf32, #tpu.memory_space<vmem>>, vector<2x32xf32>,
    %c2 = arith.constant 2 : index
    %c0_43 = arith.constant 0 : index
    %61 = vector.load %arg24[%c2, %c0_43] : memref<16x128xf32, #tpu.memory_space<vmem>>, vector<2x128xf32>
    %cst_44 = arith.constant dense<0.000000e+00> : vector<2x128xf32>
    %62 = tpu.matmul %38, %14, %cst_44 {dimension_numbers = #tpu.dot_dimension_numbers<[1], [0], [0], [1], [0, 0, 1, 1], [], []>} : vector<2x32xf32>, vector<32x128xf32>, vector<2x128xf32> -> vector<2x128xf32>
    %63 = arith.addf %61, %62 : vector<2x128xf32>
    %64 = arith.negf %63 : vector<2x128xf32>
    %65 = math.exp %64 : vector<2x128xf32>
    %cst_45 = arith.constant 1.000000e+00 : f32
    %66 = vector.broadcast %cst_45 : f32 to vector<2x128xf32>
    %67 = arith.addf %66, %65 : vector<2x128xf32>
    %68 = arith.divf %66, %67 : vector<2x128xf32>
    %69 = vector.extract_strided_slice %68 {offsets = [0, 32], sizes = [2, 32], strides = [1, 1]} : vector<2x128xf32> to vector<2x32xf32>
    %70 = arith.mulf %69, %35 : vector<2x32xf32>
    %71 = vector.extract_strided_slice %68 {offsets = [0, 0], sizes = [2, 32], strides = [1, 1]} : vector<2x128xf32> to vector<2x32xf32>
    %72 = vector.extract_strided_slice %63 {offsets = [0, 64], sizes = [2, 32], strides = [1, 1]} : vector<2x128xf32> to vector<2x32xf32>
    %73 = math.tanh %72 : vector<2x32xf32>
    %74 = arith.mulf %71, %73 : vector<2x32xf32>
    %75 = arith.addf %70, %74 : vector<2x32xf32>
    %76 = vector.extract_strided_slice %68 {offsets = [0, 96], sizes = [2, 32], strides = [1, 1]} : vector<2x128xf32> to vector<2x32xf32>
    %77 = math.tanh %75 : vector<2x32xf32>
    %78 = arith.mulf %76, %77 : vector<2x32xf32>
    %c2_46 = arith.constant 2 : index
    %c0_47 = arith.constant 0 : index
    %79 = vector.load %arg25[%c2_46, %c0_47] : memref<16x128xf32, #tpu.memory_space<vmem>>, vector<2x128xf32>
    %cst_48 = arith.constant dense<0.000000e+00> : vector<2x128xf32>
    %80 = tpu.matmul %78, %15, %cst_48 {dimension_numbers = #tpu.dot_dimension_numbers<[1], [0], [0], [1], [0, 0, 1, 1], [], []>} : vector<2x32xf32>, vector<32x128xf32>, vector<2x128xf32> -> vector<2x128xf32>
    %81 = arith.addf %79, %80 : vector<2x128xf32>
    %cst_49 = arith.constant dense<0.000000e+00> : vector<2x128xf32>
    %82 = tpu.matmul %58, %16, %cst_49 {dimension_numbers = #tpu.dot_dimension_numbers<[1], [0], [0], [1], [0, 0, 1, 1], [], []>} : vector<2x32xf32>, vector<32x128xf32>, vector<2x128xf32> -> vector<2x128xf32>
    %83 = arith.addf %81, %82 : vector<2x128xf32>
    %84 = arith.negf %83 : vector<2x128xf32>
    %85 = math.exp %84 : vector<2x128xf32>
    %cst_50 = arith.constant 1.000000e+00 : f32
    %86 = vector.broadcast %cst_50 : f32 to vector<2x128xf32>
    %87 = arith.addf %86, %85 : vector<2x128xf32>
    %88 = arith.divf %86, %87 : vector<2x128xf32>
    %89 = vector.extract_strided_slice %88 {offsets = [0, 32], sizes = [2, 32], strides = [1, 1]} : vector<2x128xf32> to vector<2x32xf32>
    %90 = arith.mulf %89, %55 : vector<2x32xf32>
    %91 = vector.extract_strided_slice %88 {offsets = [0, 0], sizes = [2, 32], strides = [1, 1]} : vector<2x128xf32> to vector<2x32xf32>
    %92 = vector.extract_strided_slice %83 {offsets = [0, 64], sizes = [2, 32], strides = [1, 1]} : vector<2x128xf32> to vector<2x32xf32>
    %93 = math.tanh %92 : vector<2x32xf32>
    %94 = arith.mulf %91, %93 : vector<2x32xf32>
    %95 = arith.addf %90, %94 : vector<2x32xf32>
    %96 = vector.extract_strided_slice %88 {offsets = [0, 96], sizes = [2, 32], strides = [1, 1]} : vector<2x128xf32> to vector<2x32xf32>
    %97 = math.tanh %95 : vector<2x32xf32>
    %98 = arith.mulf %96, %97 : vector<2x32xf32>
    %c2_51 = arith.constant 2 : index
    %c0_52 = arith.constant 0 : index
    %99 = vector.load %arg26[%c2_51, %c0_52] : memref<16x32xf32, #tpu.memory_space<vmem>>, vector<2x32xf32>
    tpu.vector_store %arg26[%c2_51, %c0_52], %78 {strides = array<i32>} : memref<16x32xf32, #tpu.memory_space<vmem>>, vector<2x32xf32>,
    %c2_53 = arith.constant 2 : index
    %c0_54 = arith.constant 0 : index
    %100 = vector.load %arg27[%c2_53, %c0_54] : memref<16x32xf32, #tpu.memory_space<vmem>>, vector<2x32xf32>
    tpu.vector_store %arg27[%c2_53, %c0_54], %98 {strides = array<i32>} : memref<16x32xf32, #tpu.memory_space<vmem>>, vector<2x32xf32>,
    %c4 = arith.constant 4 : index
    %c0_55 = arith.constant 0 : index
    %101 = vector.load %arg24[%c4, %c0_55] : memref<16x128xf32, #tpu.memory_space<vmem>>, vector<2x128xf32>
    %cst_56 = arith.constant dense<0.000000e+00> : vector<2x128xf32>
    %102 = tpu.matmul %78, %14, %cst_56 {dimension_numbers = #tpu.dot_dimension_numbers<[1], [0], [0], [1], [0, 0, 1, 1], [], []>} : vector<2x32xf32>, vector<32x128xf32>, vector<2x128xf32> -> vector<2x128xf32>
    %103 = arith.addf %101, %102 : vector<2x128xf32>
    %104 = arith.negf %103 : vector<2x128xf32>
    %105 = math.exp %104 : vector<2x128xf32>
    %cst_57 = arith.constant 1.000000e+00 : f32
    %106 = vector.broadcast %cst_57 : f32 to vector<2x128xf32>
    %107 = arith.addf %106, %105 : vector<2x128xf32>
    %108 = arith.divf %106, %107 : vector<2x128xf32>
    %109 = vector.extract_strided_slice %108 {offsets = [0, 32], sizes = [2, 32], strides = [1, 1]} : vector<2x128xf32> to vector<2x32xf32>
    %110 = arith.mulf %109, %75 : vector<2x32xf32>
    %111 = vector.extract_strided_slice %108 {offsets = [0, 0], sizes = [2, 32], strides = [1, 1]} : vector<2x128xf32> to vector<2x32xf32>
    %112 = vector.extract_strided_slice %103 {offsets = [0, 64], sizes = [2, 32], strides = [1, 1]} : vector<2x128xf32> to vector<2x32xf32>
    %113 = math.tanh %112 : vector<2x32xf32>
    %114 = arith.mulf %111, %113 : vector<2x32xf32>
    %115 = arith.addf %110, %114 : vector<2x32xf32>
    %116 = vector.extract_strided_slice %108 {offsets = [0, 96], sizes = [2, 32], strides = [1, 1]} : vector<2x128xf32> to vector<2x32xf32>
    %117 = math.tanh %115 : vector<2x32xf32>
    %118 = arith.mulf %116, %117 : vector<2x32xf32>
    %c4_58 = arith.constant 4 : index
    %c0_59 = arith.constant 0 : index
    %119 = vector.load %arg25[%c4_58, %c0_59] : memref<16x128xf32, #tpu.memory_space<vmem>>, vector<2x128xf32>
    %cst_60 = arith.constant dense<0.000000e+00> : vector<2x128xf32>
    %120 = tpu.matmul %118, %15, %cst_60 {dimension_numbers = #tpu.dot_dimension_numbers<[1], [0], [0], [1], [0, 0, 1, 1], [], []>} : vector<2x32xf32>, vector<32x128xf32>, vector<2x128xf32> -> vector<2x128xf32>
    %121 = arith.addf %119, %120 : vector<2x128xf32>
    %cst_61 = arith.constant dense<0.000000e+00> : vector<2x128xf32>
    %122 = tpu.matmul %98, %16, %cst_61 {dimension_numbers = #tpu.dot_dimension_numbers<[1], [0], [0], [1], [0, 0, 1, 1], [], []>} : vector<2x32xf32>, vector<32x128xf32>, vector<2x128xf32> -> vector<2x128xf32>
    %123 = arith.addf %121, %122 : vector<2x128xf32>
    %124 = arith.negf %123 : vector<2x128xf32>
    %125 = math.exp %124 : vector<2x128xf32>
    %cst_62 = arith.constant 1.000000e+00 : f32
    %126 = vector.broadcast %cst_62 : f32 to vector<2x128xf32>
    %127 = arith.addf %126, %125 : vector<2x128xf32>
    %128 = arith.divf %126, %127 : vector<2x128xf32>
    %129 = vector.extract_strided_slice %128 {offsets = [0, 32], sizes = [2, 32], strides = [1, 1]} : vector<2x128xf32> to vector<2x32xf32>
    %130 = arith.mulf %129, %95 : vector<2x32xf32>
    %131 = vector.extract_strided_slice %128 {offsets = [0, 0], sizes = [2, 32], strides = [1, 1]} : vector<2x128xf32> to vector<2x32xf32>
    %132 = vector.extract_strided_slice %123 {offsets = [0, 64], sizes = [2, 32], strides = [1, 1]} : vector<2x128xf32> to vector<2x32xf32>
    %133 = math.tanh %132 : vector<2x32xf32>
    %134 = arith.mulf %131, %133 : vector<2x32xf32>
    %135 = arith.addf %130, %134 : vector<2x32xf32>
    %136 = vector.extract_strided_slice %128 {offsets = [0, 96], sizes = [2, 32], strides = [1, 1]} : vector<2x128xf32> to vector<2x32xf32>
    %137 = math.tanh %135 : vector<2x32xf32>
    %138 = arith.mulf %136, %137 : vector<2x32xf32>
    %c4_63 = arith.constant 4 : index
    %c0_64 = arith.constant 0 : index
    %139 = vector.load %arg26[%c4_63, %c0_64] : memref<16x32xf32, #tpu.memory_space<vmem>>, vector<2x32xf32>
    tpu.vector_store %arg26[%c4_63, %c0_64], %118 {strides = array<i32>} : memref<16x32xf32, #tpu.memory_space<vmem>>, vector<2x32xf32>,
    %c4_65 = arith.constant 4 : index
    %c0_66 = arith.constant 0 : index
    %140 = vector.load %arg27[%c4_65, %c0_66] : memref<16x32xf32, #tpu.memory_space<vmem>>, vector<2x32xf32>
    tpu.vector_store %arg27[%c4_65, %c0_66], %138 {strides = array<i32>} : memref<16x32xf32, #tpu.memory_space<vmem>>, vector<2x32xf32>,
    %c6 = arith.constant 6 : index
    %c0_67 = arith.constant 0 : index
    %141 = vector.load %arg24[%c6, %c0_67] : memref<16x128xf32, #tpu.memory_space<vmem>>, vector<2x128xf32>
    %cst_68 = arith.constant dense<0.000000e+00> : vector<2x128xf32>
    %142 = tpu.matmul %118, %14, %cst_68 {dimension_numbers = #tpu.dot_dimension_numbers<[1], [0], [0], [1], [0, 0, 1, 1], [], []>} : vector<2x32xf32>, vector<32x128xf32>, vector<2x128xf32> -> vector<2x128xf32>
    %143 = arith.addf %141, %142 : vector<2x128xf32>
    %144 = arith.negf %143 : vector<2x128xf32>
    %145 = math.exp %144 : vector<2x128xf32>
    %cst_69 = arith.constant 1.000000e+00 : f32
    %146 = vector.broadcast %cst_69 : f32 to vector<2x128xf32>
    %147 = arith.addf %146, %145 : vector<2x128xf32>
    %148 = arith.divf %146, %147 : vector<2x128xf32>
    %149 = vector.extract_strided_slice %148 {offsets = [0, 32], sizes = [2, 32], strides = [1, 1]} : vector<2x128xf32> to vector<2x32xf32>
    %150 = arith.mulf %149, %115 : vector<2x32xf32>
    %151 = vector.extract_strided_slice %148 {offsets = [0, 0], sizes = [2, 32], strides = [1, 1]} : vector<2x128xf32> to vector<2x32xf32>
    %152 = vector.extract_strided_slice %143 {offsets = [0, 64], sizes = [2, 32], strides = [1, 1]} : vector<2x128xf32> to vector<2x32xf32>
    %153 = math.tanh %152 : vector<2x32xf32>
    %154 = arith.mulf %151, %153 : vector<2x32xf32>
    %155 = arith.addf %150, %154 : vector<2x32xf32>
    %156 = vector.extract_strided_slice %148 {offsets = [0, 96], sizes = [2, 32], strides = [1, 1]} : vector<2x128xf32> to vector<2x32xf32>
    %157 = math.tanh %155 : vector<2x32xf32>
    %158 = arith.mulf %156, %157 : vector<2x32xf32>
    %c6_70 = arith.constant 6 : index
    %c0_71 = arith.constant 0 : index
    %159 = vector.load %arg25[%c6_70, %c0_71] : memref<16x128xf32, #tpu.memory_space<vmem>>, vector<2x128xf32>
    %cst_72 = arith.constant dense<0.000000e+00> : vector<2x128xf32>
    %160 = tpu.matmul %158, %15, %cst_72 {dimension_numbers = #tpu.dot_dimension_numbers<[1], [0], [0], [1], [0, 0, 1, 1], [], []>} : vector<2x32xf32>, vector<32x128xf32>, vector<2x128xf32> -> vector<2x128xf32>
    %161 = arith.addf %159, %160 : vector<2x128xf32>
    %cst_73 = arith.constant dense<0.000000e+00> : vector<2x128xf32>
    %162 = tpu.matmul %138, %16, %cst_73 {dimension_numbers = #tpu.dot_dimension_numbers<[1], [0], [0], [1], [0, 0, 1, 1], [], []>} : vector<2x32xf32>, vector<32x128xf32>, vector<2x128xf32> -> vector<2x128xf32>
    %163 = arith.addf %161, %162 : vector<2x128xf32>
    %164 = arith.negf %163 : vector<2x128xf32>
    %165 = math.exp %164 : vector<2x128xf32>
    %cst_74 = arith.constant 1.000000e+00 : f32
    %166 = vector.broadcast %cst_74 : f32 to vector<2x128xf32>
    %167 = arith.addf %166, %165 : vector<2x128xf32>
    %168 = arith.divf %166, %167 : vector<2x128xf32>
    %169 = vector.extract_strided_slice %168 {offsets = [0, 32], sizes = [2, 32], strides = [1, 1]} : vector<2x128xf32> to vector<2x32xf32>
    %170 = arith.mulf %169, %135 : vector<2x32xf32>
    %171 = vector.extract_strided_slice %168 {offsets = [0, 0], sizes = [2, 32], strides = [1, 1]} : vector<2x128xf32> to vector<2x32xf32>
    %172 = vector.extract_strided_slice %163 {offsets = [0, 64], sizes = [2, 32], strides = [1, 1]} : vector<2x128xf32> to vector<2x32xf32>
    %173 = math.tanh %172 : vector<2x32xf32>
    %174 = arith.mulf %171, %173 : vector<2x32xf32>
    %175 = arith.addf %170, %174 : vector<2x32xf32>
    %176 = vector.extract_strided_slice %168 {offsets = [0, 96], sizes = [2, 32], strides = [1, 1]} : vector<2x128xf32> to vector<2x32xf32>
    %177 = math.tanh %175 : vector<2x32xf32>
    %178 = arith.mulf %176, %177 : vector<2x32xf32>
    %c6_75 = arith.constant 6 : index
    %c0_76 = arith.constant 0 : index
    %179 = vector.load %arg26[%c6_75, %c0_76] : memref<16x32xf32, #tpu.memory_space<vmem>>, vector<2x32xf32>
    tpu.vector_store %arg26[%c6_75, %c0_76], %158 {strides = array<i32>} : memref<16x32xf32, #tpu.memory_space<vmem>>, vector<2x32xf32>,
    %c6_77 = arith.constant 6 : index
    %c0_78 = arith.constant 0 : index
    %180 = vector.load %arg27[%c6_77, %c0_78] : memref<16x32xf32, #tpu.memory_space<vmem>>, vector<2x32xf32>
    tpu.vector_store %arg27[%c6_77, %c0_78], %178 {strides = array<i32>} : memref<16x32xf32, #tpu.memory_space<vmem>>, vector<2x32xf32>,
    %c8 = arith.constant 8 : index
    %c0_79 = arith.constant 0 : index
    %181 = vector.load %arg24[%c8, %c0_79] : memref<16x128xf32, #tpu.memory_space<vmem>>, vector<2x128xf32>
    %cst_80 = arith.constant dense<0.000000e+00> : vector<2x128xf32>
    %182 = tpu.matmul %158, %14, %cst_80 {dimension_numbers = #tpu.dot_dimension_numbers<[1], [0], [0], [1], [0, 0, 1, 1], [], []>} : vector<2x32xf32>, vector<32x128xf32>, vector<2x128xf32> -> vector<2x128xf32>
    %183 = arith.addf %181, %182 : vector<2x128xf32>
    %184 = arith.negf %183 : vector<2x128xf32>
    %185 = math.exp %184 : vector<2x128xf32>
    %cst_81 = arith.constant 1.000000e+00 : f32
    %186 = vector.broadcast %cst_81 : f32 to vector<2x128xf32>
    %187 = arith.addf %186, %185 : vector<2x128xf32>
    %188 = arith.divf %186, %187 : vector<2x128xf32>
    %189 = vector.extract_strided_slice %188 {offsets = [0, 32], sizes = [2, 32], strides = [1, 1]} : vector<2x128xf32> to vector<2x32xf32>
    %190 = arith.mulf %189, %155 : vector<2x32xf32>
    %191 = vector.extract_strided_slice %188 {offsets = [0, 0], sizes = [2, 32], strides = [1, 1]} : vector<2x128xf32> to vector<2x32xf32>
    %192 = vector.extract_strided_slice %183 {offsets = [0, 64], sizes = [2, 32], strides = [1, 1]} : vector<2x128xf32> to vector<2x32xf32>
    %193 = math.tanh %192 : vector<2x32xf32>
    %194 = arith.mulf %191, %193 : vector<2x32xf32>
    %195 = arith.addf %190, %194 : vector<2x32xf32>
    %196 = vector.extract_strided_slice %188 {offsets = [0, 96], sizes = [2, 32], strides = [1, 1]} : vector<2x128xf32> to vector<2x32xf32>
    %197 = math.tanh %195 : vector<2x32xf32>
    %198 = arith.mulf %196, %197 : vector<2x32xf32>
    %c8_82 = arith.constant 8 : index
    %c0_83 = arith.constant 0 : index
    %199 = vector.load %arg25[%c8_82, %c0_83] : memref<16x128xf32, #tpu.memory_space<vmem>>, vector<2x128xf32>
    %cst_84 = arith.constant dense<0.000000e+00> : vector<2x128xf32>
    %200 = tpu.matmul %198, %15, %cst_84 {dimension_numbers = #tpu.dot_dimension_numbers<[1], [0], [0], [1], [0, 0, 1, 1], [], []>} : vector<2x32xf32>, vector<32x128xf32>, vector<2x128xf32> -> vector<2x128xf32>
    %201 = arith.addf %199, %200 : vector<2x128xf32>
    %cst_85 = arith.constant dense<0.000000e+00> : vector<2x128xf32>
    %202 = tpu.matmul %178, %16, %cst_85 {dimension_numbers = #tpu.dot_dimension_numbers<[1], [0], [0], [1], [0, 0, 1, 1], [], []>} : vector<2x32xf32>, vector<32x128xf32>, vector<2x128xf32> -> vector<2x128xf32>
    %203 = arith.addf %201, %202 : vector<2x128xf32>
    %204 = arith.negf %203 : vector<2x128xf32>
    %205 = math.exp %204 : vector<2x128xf32>
    %cst_86 = arith.constant 1.000000e+00 : f32
    %206 = vector.broadcast %cst_86 : f32 to vector<2x128xf32>
    %207 = arith.addf %206, %205 : vector<2x128xf32>
    %208 = arith.divf %206, %207 : vector<2x128xf32>
    %209 = vector.extract_strided_slice %208 {offsets = [0, 32], sizes = [2, 32], strides = [1, 1]} : vector<2x128xf32> to vector<2x32xf32>
    %210 = arith.mulf %209, %175 : vector<2x32xf32>
    %211 = vector.extract_strided_slice %208 {offsets = [0, 0], sizes = [2, 32], strides = [1, 1]} : vector<2x128xf32> to vector<2x32xf32>
    %212 = vector.extract_strided_slice %203 {offsets = [0, 64], sizes = [2, 32], strides = [1, 1]} : vector<2x128xf32> to vector<2x32xf32>
    %213 = math.tanh %212 : vector<2x32xf32>
    %214 = arith.mulf %211, %213 : vector<2x32xf32>
    %215 = arith.addf %210, %214 : vector<2x32xf32>
    %216 = vector.extract_strided_slice %208 {offsets = [0, 96], sizes = [2, 32], strides = [1, 1]} : vector<2x128xf32> to vector<2x32xf32>
    %217 = math.tanh %215 : vector<2x32xf32>
    %218 = arith.mulf %216, %217 : vector<2x32xf32>
    %c8_87 = arith.constant 8 : index
    %c0_88 = arith.constant 0 : index
    %219 = vector.load %arg26[%c8_87, %c0_88] : memref<16x32xf32, #tpu.memory_space<vmem>>, vector<2x32xf32>
    tpu.vector_store %arg26[%c8_87, %c0_88], %198 {strides = array<i32>} : memref<16x32xf32, #tpu.memory_space<vmem>>, vector<2x32xf32>,
    %c8_89 = arith.constant 8 : index
    %c0_90 = arith.constant 0 : index
    %220 = vector.load %arg27[%c8_89, %c0_90] : memref<16x32xf32, #tpu.memory_space<vmem>>, vector<2x32xf32>
    tpu.vector_store %arg27[%c8_89, %c0_90], %218 {strides = array<i32>} : memref<16x32xf32, #tpu.memory_space<vmem>>, vector<2x32xf32>,
    %c10 = arith.constant 10 : index
    %c0_91 = arith.constant 0 : index
    %221 = vector.load %arg24[%c10, %c0_91] : memref<16x128xf32, #tpu.memory_space<vmem>>, vector<2x128xf32>
    %cst_92 = arith.constant dense<0.000000e+00> : vector<2x128xf32>
    %222 = tpu.matmul %198, %14, %cst_92 {dimension_numbers = #tpu.dot_dimension_numbers<[1], [0], [0], [1], [0, 0, 1, 1], [], []>} : vector<2x32xf32>, vector<32x128xf32>, vector<2x128xf32> -> vector<2x128xf32>
    %223 = arith.addf %221, %222 : vector<2x128xf32>
    %224 = arith.negf %223 : vector<2x128xf32>
    %225 = math.exp %224 : vector<2x128xf32>
    %cst_93 = arith.constant 1.000000e+00 : f32
    %226 = vector.broadcast %cst_93 : f32 to vector<2x128xf32>
    %227 = arith.addf %226, %225 : vector<2x128xf32>
    %228 = arith.divf %226, %227 : vector<2x128xf32>
    %229 = vector.extract_strided_slice %228 {offsets = [0, 32], sizes = [2, 32], strides = [1, 1]} : vector<2x128xf32> to vector<2x32xf32>
    %230 = arith.mulf %229, %195 : vector<2x32xf32>
    %231 = vector.extract_strided_slice %228 {offsets = [0, 0], sizes = [2, 32], strides = [1, 1]} : vector<2x128xf32> to vector<2x32xf32>
    %232 = vector.extract_strided_slice %223 {offsets = [0, 64], sizes = [2, 32], strides = [1, 1]} : vector<2x128xf32> to vector<2x32xf32>
    %233 = math.tanh %232 : vector<2x32xf32>
    %234 = arith.mulf %231, %233 : vector<2x32xf32>
    %235 = arith.addf %230, %234 : vector<2x32xf32>
    %236 = vector.extract_strided_slice %228 {offsets = [0, 96], sizes = [2, 32], strides = [1, 1]} : vector<2x128xf32> to vector<2x32xf32>
    %237 = math.tanh %235 : vector<2x32xf32>
    %238 = arith.mulf %236, %237 : vector<2x32xf32>
    %c10_94 = arith.constant 10 : index
    %c0_95 = arith.constant 0 : index
    %239 = vector.load %arg25[%c10_94, %c0_95] : memref<16x128xf32, #tpu.memory_space<vmem>>, vector<2x128xf32>
    %cst_96 = arith.constant dense<0.000000e+00> : vector<2x128xf32>
    %240 = tpu.matmul %238, %15, %cst_96 {dimension_numbers = #tpu.dot_dimension_numbers<[1], [0], [0], [1], [0, 0, 1, 1], [], []>} : vector<2x32xf32>, vector<32x128xf32>, vector<2x128xf32> -> vector<2x128xf32>
    %241 = arith.addf %239, %240 : vector<2x128xf32>
    %cst_97 = arith.constant dense<0.000000e+00> : vector<2x128xf32>
    %242 = tpu.matmul %218, %16, %cst_97 {dimension_numbers = #tpu.dot_dimension_numbers<[1], [0], [0], [1], [0, 0, 1, 1], [], []>} : vector<2x32xf32>, vector<32x128xf32>, vector<2x128xf32> -> vector<2x128xf32>
    %243 = arith.addf %241, %242 : vector<2x128xf32>
    %244 = arith.negf %243 : vector<2x128xf32>
    %245 = math.exp %244 : vector<2x128xf32>
    %cst_98 = arith.constant 1.000000e+00 : f32
    %246 = vector.broadcast %cst_98 : f32 to vector<2x128xf32>
    %247 = arith.addf %246, %245 : vector<2x128xf32>
    %248 = arith.divf %246, %247 : vector<2x128xf32>
    %249 = vector.extract_strided_slice %248 {offsets = [0, 32], sizes = [2, 32], strides = [1, 1]} : vector<2x128xf32> to vector<2x32xf32>
    %250 = arith.mulf %249, %215 : vector<2x32xf32>
    %251 = vector.extract_strided_slice %248 {offsets = [0, 0], sizes = [2, 32], strides = [1, 1]} : vector<2x128xf32> to vector<2x32xf32>
    %252 = vector.extract_strided_slice %243 {offsets = [0, 64], sizes = [2, 32], strides = [1, 1]} : vector<2x128xf32> to vector<2x32xf32>
    %253 = math.tanh %252 : vector<2x32xf32>
    %254 = arith.mulf %251, %253 : vector<2x32xf32>
    %255 = arith.addf %250, %254 : vector<2x32xf32>
    %256 = vector.extract_strided_slice %248 {offsets = [0, 96], sizes = [2, 32], strides = [1, 1]} : vector<2x128xf32> to vector<2x32xf32>
    %257 = math.tanh %255 : vector<2x32xf32>
    %258 = arith.mulf %256, %257 : vector<2x32xf32>
    %c10_99 = arith.constant 10 : index
    %c0_100 = arith.constant 0 : index
    %259 = vector.load %arg26[%c10_99, %c0_100] : memref<16x32xf32, #tpu.memory_space<vmem>>, vector<2x32xf32>
    tpu.vector_store %arg26[%c10_99, %c0_100], %238 {strides = array<i32>} : memref<16x32xf32, #tpu.memory_space<vmem>>, vector<2x32xf32>,
    %c10_101 = arith.constant 10 : index
    %c0_102 = arith.constant 0 : index
    %260 = vector.load %arg27[%c10_101, %c0_102] : memref<16x32xf32, #tpu.memory_space<vmem>>, vector<2x32xf32>
    tpu.vector_store %arg27[%c10_101, %c0_102], %258 {strides = array<i32>} : memref<16x32xf32, #tpu.memory_space<vmem>>, vector<2x32xf32>,
    %c12 = arith.constant 12 : index
    %c0_103 = arith.constant 0 : index
    %261 = vector.load %arg24[%c12, %c0_103] : memref<16x128xf32, #tpu.memory_space<vmem>>, vector<2x128xf32>
    %cst_104 = arith.constant dense<0.000000e+00> : vector<2x128xf32>
    %262 = tpu.matmul %238, %14, %cst_104 {dimension_numbers = #tpu.dot_dimension_numbers<[1], [0], [0], [1], [0, 0, 1, 1], [], []>} : vector<2x32xf32>, vector<32x128xf32>, vector<2x128xf32> -> vector<2x128xf32>
    %263 = arith.addf %261, %262 : vector<2x128xf32>
    %264 = arith.negf %263 : vector<2x128xf32>
    %265 = math.exp %264 : vector<2x128xf32>
    %cst_105 = arith.constant 1.000000e+00 : f32
    %266 = vector.broadcast %cst_105 : f32 to vector<2x128xf32>
    %267 = arith.addf %266, %265 : vector<2x128xf32>
    %268 = arith.divf %266, %267 : vector<2x128xf32>
    %269 = vector.extract_strided_slice %268 {offsets = [0, 32], sizes = [2, 32], strides = [1, 1]} : vector<2x128xf32> to vector<2x32xf32>
    %270 = arith.mulf %269, %235 : vector<2x32xf32>
    %271 = vector.extract_strided_slice %268 {offsets = [0, 0], sizes = [2, 32], strides = [1, 1]} : vector<2x128xf32> to vector<2x32xf32>
    %272 = vector.extract_strided_slice %263 {offsets = [0, 64], sizes = [2, 32], strides = [1, 1]} : vector<2x128xf32> to vector<2x32xf32>
    %273 = math.tanh %272 : vector<2x32xf32>
    %274 = arith.mulf %271, %273 : vector<2x32xf32>
    %275 = arith.addf %270, %274 : vector<2x32xf32>
    %276 = vector.extract_strided_slice %268 {offsets = [0, 96], sizes = [2, 32], strides = [1, 1]} : vector<2x128xf32> to vector<2x32xf32>
    %277 = math.tanh %275 : vector<2x32xf32>
    %278 = arith.mulf %276, %277 : vector<2x32xf32>
    %c12_106 = arith.constant 12 : index
    %c0_107 = arith.constant 0 : index
    %279 = vector.load %arg25[%c12_106, %c0_107] : memref<16x128xf32, #tpu.memory_space<vmem>>, vector<2x128xf32>
    %cst_108 = arith.constant dense<0.000000e+00> : vector<2x128xf32>
    %280 = tpu.matmul %278, %15, %cst_108 {dimension_numbers = #tpu.dot_dimension_numbers<[1], [0], [0], [1], [0, 0, 1, 1], [], []>} : vector<2x32xf32>, vector<32x128xf32>, vector<2x128xf32> -> vector<2x128xf32>
    %281 = arith.addf %279, %280 : vector<2x128xf32>
    %cst_109 = arith.constant dense<0.000000e+00> : vector<2x128xf32>
    %282 = tpu.matmul %258, %16, %cst_109 {dimension_numbers = #tpu.dot_dimension_numbers<[1], [0], [0], [1], [0, 0, 1, 1], [], []>} : vector<2x32xf32>, vector<32x128xf32>, vector<2x128xf32> -> vector<2x128xf32>
    %283 = arith.addf %281, %282 : vector<2x128xf32>
    %284 = arith.negf %283 : vector<2x128xf32>
    %285 = math.exp %284 : vector<2x128xf32>
    %cst_110 = arith.constant 1.000000e+00 : f32
    %286 = vector.broadcast %cst_110 : f32 to vector<2x128xf32>
    %287 = arith.addf %286, %285 : vector<2x128xf32>
    %288 = arith.divf %286, %287 : vector<2x128xf32>
    %289 = vector.extract_strided_slice %288 {offsets = [0, 32], sizes = [2, 32], strides = [1, 1]} : vector<2x128xf32> to vector<2x32xf32>
    %290 = arith.mulf %289, %255 : vector<2x32xf32>
    %291 = vector.extract_strided_slice %288 {offsets = [0, 0], sizes = [2, 32], strides = [1, 1]} : vector<2x128xf32> to vector<2x32xf32>
    %292 = vector.extract_strided_slice %283 {offsets = [0, 64], sizes = [2, 32], strides = [1, 1]} : vector<2x128xf32> to vector<2x32xf32>
    %293 = math.tanh %292 : vector<2x32xf32>
    %294 = arith.mulf %291, %293 : vector<2x32xf32>
    %295 = arith.addf %290, %294 : vector<2x32xf32>
    %296 = vector.extract_strided_slice %288 {offsets = [0, 96], sizes = [2, 32], strides = [1, 1]} : vector<2x128xf32> to vector<2x32xf32>
    %297 = math.tanh %295 : vector<2x32xf32>
    %298 = arith.mulf %296, %297 : vector<2x32xf32>
    %c12_111 = arith.constant 12 : index
    %c0_112 = arith.constant 0 : index
    %299 = vector.load %arg26[%c12_111, %c0_112] : memref<16x32xf32, #tpu.memory_space<vmem>>, vector<2x32xf32>
    tpu.vector_store %arg26[%c12_111, %c0_112], %278 {strides = array<i32>} : memref<16x32xf32, #tpu.memory_space<vmem>>, vector<2x32xf32>,
    %c12_113 = arith.constant 12 : index
    %c0_114 = arith.constant 0 : index
    %300 = vector.load %arg27[%c12_113, %c0_114] : memref<16x32xf32, #tpu.memory_space<vmem>>, vector<2x32xf32>
    tpu.vector_store %arg27[%c12_113, %c0_114], %298 {strides = array<i32>} : memref<16x32xf32, #tpu.memory_space<vmem>>, vector<2x32xf32>,
    %c14 = arith.constant 14 : index
    %c0_115 = arith.constant 0 : index
    %301 = vector.load %arg24[%c14, %c0_115] : memref<16x128xf32, #tpu.memory_space<vmem>>, vector<2x128xf32>
    %cst_116 = arith.constant dense<0.000000e+00> : vector<2x128xf32>
    %302 = tpu.matmul %278, %14, %cst_116 {dimension_numbers = #tpu.dot_dimension_numbers<[1], [0], [0], [1], [0, 0, 1, 1], [], []>} : vector<2x32xf32>, vector<32x128xf32>, vector<2x128xf32> -> vector<2x128xf32>
    %303 = arith.addf %301, %302 : vector<2x128xf32>
    %304 = arith.negf %303 : vector<2x128xf32>
    %305 = math.exp %304 : vector<2x128xf32>
    %cst_117 = arith.constant 1.000000e+00 : f32
    %306 = vector.broadcast %cst_117 : f32 to vector<2x128xf32>
    %307 = arith.addf %306, %305 : vector<2x128xf32>
    %308 = arith.divf %306, %307 : vector<2x128xf32>
    %309 = vector.extract_strided_slice %308 {offsets = [0, 32], sizes = [2, 32], strides = [1, 1]} : vector<2x128xf32> to vector<2x32xf32>
    %310 = arith.mulf %309, %275 : vector<2x32xf32>
    %311 = vector.extract_strided_slice %308 {offsets = [0, 0], sizes = [2, 32], strides = [1, 1]} : vector<2x128xf32> to vector<2x32xf32>
    %312 = vector.extract_strided_slice %303 {offsets = [0, 64], sizes = [2, 32], strides = [1, 1]} : vector<2x128xf32> to vector<2x32xf32>
    %313 = math.tanh %312 : vector<2x32xf32>
    %314 = arith.mulf %311, %313 : vector<2x32xf32>
    %315 = arith.addf %310, %314 : vector<2x32xf32>
    %316 = vector.extract_strided_slice %308 {offsets = [0, 96], sizes = [2, 32], strides = [1, 1]} : vector<2x128xf32> to vector<2x32xf32>
    %317 = math.tanh %315 : vector<2x32xf32>
    %318 = arith.mulf %316, %317 : vector<2x32xf32>
    %c14_118 = arith.constant 14 : index
    %c0_119 = arith.constant 0 : index
    %319 = vector.load %arg25[%c14_118, %c0_119] : memref<16x128xf32, #tpu.memory_space<vmem>>, vector<2x128xf32>
    %cst_120 = arith.constant dense<0.000000e+00> : vector<2x128xf32>
    %320 = tpu.matmul %318, %15, %cst_120 {dimension_numbers = #tpu.dot_dimension_numbers<[1], [0], [0], [1], [0, 0, 1, 1], [], []>} : vector<2x32xf32>, vector<32x128xf32>, vector<2x128xf32> -> vector<2x128xf32>
    %321 = arith.addf %319, %320 : vector<2x128xf32>
    %cst_121 = arith.constant dense<0.000000e+00> : vector<2x128xf32>
    %322 = tpu.matmul %298, %16, %cst_121 {dimension_numbers = #tpu.dot_dimension_numbers<[1], [0], [0], [1], [0, 0, 1, 1], [], []>} : vector<2x32xf32>, vector<32x128xf32>, vector<2x128xf32> -> vector<2x128xf32>
    %323 = arith.addf %321, %322 : vector<2x128xf32>
    %324 = arith.negf %323 : vector<2x128xf32>
    %325 = math.exp %324 : vector<2x128xf32>
    %cst_122 = arith.constant 1.000000e+00 : f32
    %326 = vector.broadcast %cst_122 : f32 to vector<2x128xf32>
    %327 = arith.addf %326, %325 : vector<2x128xf32>
    %328 = arith.divf %326, %327 : vector<2x128xf32>
    %329 = vector.extract_strided_slice %328 {offsets = [0, 32], sizes = [2, 32], strides = [1, 1]} : vector<2x128xf32> to vector<2x32xf32>
    %330 = arith.mulf %329, %295 : vector<2x32xf32>
    %331 = vector.extract_strided_slice %328 {offsets = [0, 0], sizes = [2, 32], strides = [1, 1]} : vector<2x128xf32> to vector<2x32xf32>
    %332 = vector.extract_strided_slice %323 {offsets = [0, 64], sizes = [2, 32], strides = [1, 1]} : vector<2x128xf32> to vector<2x32xf32>
    %333 = math.tanh %332 : vector<2x32xf32>
    %334 = arith.mulf %331, %333 : vector<2x32xf32>
    %335 = arith.addf %330, %334 : vector<2x32xf32>
    %336 = vector.extract_strided_slice %328 {offsets = [0, 96], sizes = [2, 32], strides = [1, 1]} : vector<2x128xf32> to vector<2x32xf32>
    %337 = math.tanh %335 : vector<2x32xf32>
    %338 = arith.mulf %336, %337 : vector<2x32xf32>
    %c14_123 = arith.constant 14 : index
    %c0_124 = arith.constant 0 : index
    %339 = vector.load %arg26[%c14_123, %c0_124] : memref<16x32xf32, #tpu.memory_space<vmem>>, vector<2x32xf32>
    tpu.vector_store %arg26[%c14_123, %c0_124], %318 {strides = array<i32>} : memref<16x32xf32, #tpu.memory_space<vmem>>, vector<2x32xf32>,
    %c14_125 = arith.constant 14 : index
    %c0_126 = arith.constant 0 : index
    %340 = vector.load %arg27[%c14_125, %c0_126] : memref<16x32xf32, #tpu.memory_space<vmem>>, vector<2x32xf32>
    tpu.vector_store %arg27[%c14_125, %c0_126], %338 {strides = array<i32>} : memref<16x32xf32, #tpu.memory_space<vmem>>, vector<2x32xf32>,
    %c0_127 = arith.constant 0 : index
    %c0_128 = arith.constant 0 : index
    %341 = vector.load %arg20[%c0_127, %c0_128] : memref<2x32xf32, #tpu.memory_space<vmem>>, vector<2x32xf32>
    tpu.vector_store %arg20[%c0_127, %c0_128], %318 {strides = array<i32>} : memref<2x32xf32, #tpu.memory_space<vmem>>, vector<2x32xf32>,
    %c0_129 = arith.constant 0 : index
    %c0_130 = arith.constant 0 : index
    %342 = vector.load %arg21[%c0_129, %c0_130] : memref<2x32xf32, #tpu.memory_space<vmem>>, vector<2x32xf32>
    tpu.vector_store %arg21[%c0_129, %c0_130], %315 {strides = array<i32>} : memref<2x32xf32, #tpu.memory_space<vmem>>, vector<2x32xf32>,
    %c0_131 = arith.constant 0 : index
    %c0_132 = arith.constant 0 : index
    %343 = vector.load %arg22[%c0_131, %c0_132] : memref<2x32xf32, #tpu.memory_space<vmem>>, vector<2x32xf32>
    tpu.vector_store %arg22[%c0_131, %c0_132], %338 {strides = array<i32>} : memref<2x32xf32, #tpu.memory_space<vmem>>, vector<2x32xf32>,
    %c0_133 = arith.constant 0 : index
    %c0_134 = arith.constant 0 : index
    %344 = vector.load %arg23[%c0_133, %c0_134] : memref<2x32xf32, #tpu.memory_space<vmem>>, vector<2x32xf32>
    tpu.vector_store %arg23[%c0_133, %c0_134], %335 {strides = array<i32>} : memref<2x32xf32, #tpu.memory_space<vmem>>, vector<2x32xf32>,
    %c0_135 = arith.constant 0 : index
    %c0_136 = arith.constant 0 : index
    %345 = vector.load %arg26[%c0_135, %c0_136] : memref<16x32xf32, #tpu.memory_space<vmem>>, vector<16x32xf32>
    %c0_137 = arith.constant 0 : index
    %c0_138 = arith.constant 0 : index
    %346 = vector.load %arg13[%c0_137, %c0_138] : memref<32x6xf32, #tpu.memory_space<vmem>>, vector<32x6xf32>
    %cst_139 = arith.constant dense<0.000000e+00> : vector<16x6xf32>
    %347 = tpu.matmul %345, %346, %cst_139 {dimension_numbers = #tpu.dot_dimension_numbers<[1], [0], [0], [1], [0, 0, 1, 1], [], []>} : vector<16x32xf32>, vector<32x6xf32>, vector<16x6xf32> -> vector<16x6xf32>
    %c0_140 = arith.constant 0 : index
    %c0_141 = arith.constant 0 : index
    %348 = vector.load %arg14[%c0_140, %c0_141] : memref<1x6xf32, #tpu.memory_space<vmem>>, vector<1x6xf32>
    %349 = vector.broadcast %348 : vector<1x6xf32> to vector<16x6xf32>
    %350 = arith.addf %347, %349 : vector<16x6xf32>
    %c0_142 = arith.constant 0 : index
    %c0_143 = arith.constant 0 : index
    %351 = vector.load %arg17[%c0_142, %c0_143] : memref<16x6xf32, #tpu.memory_space<vmem>>, vector<16x6xf32>
    tpu.vector_store %arg17[%c0_142, %c0_143], %350 {strides = array<i32>} : memref<16x6xf32, #tpu.memory_space<vmem>>, vector<16x6xf32>,
    %c0_144 = arith.constant 0 : index
    %c0_145 = arith.constant 0 : index
    %352 = vector.load %arg27[%c0_144, %c0_145] : memref<16x32xf32, #tpu.memory_space<vmem>>, vector<16x32xf32>
    %c0_146 = arith.constant 0 : index
    %c0_147 = arith.constant 0 : index
    %353 = vector.load %arg15[%c0_146, %c0_147] : memref<32x5xf32, #tpu.memory_space<vmem>>, vector<32x5xf32>
    %cst_148 = arith.constant dense<0.000000e+00> : vector<16x5xf32>
    %354 = tpu.matmul %352, %353, %cst_148 {dimension_numbers = #tpu.dot_dimension_numbers<[1], [0], [0], [1], [0, 0, 1, 1], [], []>} : vector<16x32xf32>, vector<32x5xf32>, vector<16x5xf32> -> vector<16x5xf32>
    %c0_149 = arith.constant 0 : index
    %c0_150 = arith.constant 0 : index
    %355 = vector.load %arg16[%c0_149, %c0_150] : memref<1x5xf32, #tpu.memory_space<vmem>>, vector<1x5xf32>
    %356 = vector.broadcast %355 : vector<1x5xf32> to vector<16x5xf32>
    %357 = arith.addf %354, %356 : vector<16x5xf32>
    %c0_151 = arith.constant 0 : index
    %c0_152 = arith.constant 0 : index
    %358 = vector.load %arg18[%c0_151, %c0_152] : memref<16x5xf32, #tpu.memory_space<vmem>>, vector<16x5xf32>
    tpu.vector_store %arg18[%c0_151, %c0_152], %357 {strides = array<i32>} : memref<16x5xf32, #tpu.memory_space<vmem>>, vector<16x5xf32>,
    %359 = vector.extract_strided_slice %357 {offsets = [0, 0], sizes = [16, 3], strides = [1, 1]} : vector<16x5xf32> to vector<16x3xf32>
    %360 = tpu.iota {dimensions = array<i32: 1>} : vector<16x3xi32>
    %c2_i32 = arith.constant 2 : i32
    %361 = vector.broadcast %c2_i32 : i32 to vector<16x3xi32>
    %362 = arith.cmpi eq, %360, %361 : vector<16x3xi32>
    %cst_153 = arith.constant -1.000000e+03 : f32
    %363 = vector.broadcast %cst_153 : f32 to vector<16x3xf32>
    %364 = arith.select %362, %363, %359 : vector<16x3xi1>, vector<16x3xf32>
    %cst_154 = arith.constant dense<0xFF800000> : vector<16xf32>
    %365 = vector.multi_reduction <maximumf>, %364, %cst_154 [1] : vector<16x3xf32> to vector<16xf32>
    %366 = vector.shape_cast %365 : vector<16xf32> to vector<16x1xf32>
    %367 = vector.broadcast %366 : vector<16x1xf32> to vector<16x3xf32>
    %368 = arith.subf %364, %367 : vector<16x3xf32>
    %369 = math.exp %368 : vector<16x3xf32>
    %cst_155 = arith.constant dense<0.000000e+00> : vector<16xf32>
    %370 = vector.multi_reduction <add>, %369, %cst_155 [1] : vector<16x3xf32> to vector<16xf32>
    %371 = vector.shape_cast %370 : vector<16xf32> to vector<16x1xf32>
    %372 = vector.broadcast %371 : vector<16x1xf32> to vector<16x3xf32>
    %373 = arith.divf %369, %372 : vector<16x3xf32>
    %c0_156 = arith.constant 0 : index
    %c0_157 = arith.constant 0 : index
    %374 = vector.load %arg19[%c0_156, %c0_157] : memref<16x3xf32, #tpu.memory_space<vmem>>, vector<16x3xf32>
    tpu.vector_store %arg19[%c0_156, %c0_157], %373 {strides = array<i32>} : memref<16x3xf32, #tpu.memory_space<vmem>>, vector<16x3xf32>,
    return
  }
}

</mosaic_0001>

<bundles_post_ra>
// kernel: tpu_custom_call.1
= control target key start
LH: loop header
LB: loop body
LE: loop exit
PB: predicated region body
PF: predicated region fallthrough
CT: control target
= control target key end

     0   :  { %s4286_s0 = inlined_call_operand.vmem [shape: f32[16,6], index: 0, kind: input, shape index: {}]   ;;  %s4287_s1 = inlined_call_operand.vmem [shape: f32[16,2], index: 1, kind: input, shape index: {}]   ;;  %s4288_s2 = inlined_call_operand.vmem [shape: f32[2,32], index: 2, kind: input, shape index: {}]   ;;  %s4289_s3 = inlined_call_operand.vmem [shape: f32[2,32], index: 3, kind: input, shape index: {}]   ;;  %s4290_s4 = inlined_call_operand.vmem [shape: f32[2,32], index: 4, kind: input, shape index: {}]   ;;  %s4291_s5 = inlined_call_operand.vmem [shape: f32[2,32], index: 5, kind: input, shape index: {}]   ;;  %s4292_s6 = inlined_call_operand.vmem [shape: f32[6,128], index: 6, kind: input, shape index: {}]   ;;  %s4293_s7 = inlined_call_operand.vmem [shape: f32[32,128], index: 7, kind: input, shape index: {}]   ;;  %s4294_s8 = inlined_call_operand.vmem [shape: f32[1,128], index: 8, kind: input, shape index: {}]   ;;  %s4295_s9 = inlined_call_operand.vmem [shape: f32[2,128], index: 9, kind: input, shape index: {}]   ;;  %s4296_s10 = inlined_call_operand.vmem [shape: f32[32,128], index: 10, kind: input, shape index: {}]   ;;  %s4297_s11 = inlined_call_operand.vmem [shape: f32[32,128], index: 11, kind: input, shape index: {}]   ;;  %s4298_s12 = inlined_call_operand.vmem [shape: f32[1,128], index: 12, kind: input, shape index: {}]   ;;  %s4299_s13 = inlined_call_operand.vmem [shape: f32[32,6], index: 13, kind: input, shape index: {}]   ;;  %s4300_s14 = inlined_call_operand.vmem [shape: f32[1,6], index: 14, kind: input, shape index: {}]   ;;  %s4301_s15 = inlined_call_operand.vmem [shape: f32[32,5], index: 15, kind: input, shape index: {}]   ;;  %s4302_s16 = inlined_call_operand.vmem [shape: f32[1,5], index: 16, kind: input, shape index: {}]   ;;  %s4303_s17 = inlined_call_operand.vmem [shape: f32[16,6], index: 17, kind: output, shape index: {0}]   ;;  %s4304_s18 = inlined_call_operand.vmem [shape: f32[16,5], index: 18, kind: output, shape index: {1}]   ;;  %s4305_s19 = inlined_call_operand.vmem [shape: f32[16,3], index: 19, kind: output, shape index: {2}]   ;;  %s4306_s20 = inlined_call_operand.hbm [shape: f32[2,32], index: 20, kind: output, shape index: {3}]   ;;  %s4307_s21 = inlined_call_operand.hbm [shape: f32[2,32], index: 21, kind: output, shape index: {4}]   ;;  %s4308_s22 = inlined_call_operand.hbm [shape: f32[2,32], index: 22, kind: output, shape index: {5}]   ;;  %s4309_s23 = inlined_call_operand.hbm [shape: f32[2,32], index: 23, kind: output, shape index: {6}]  }
   0x1   :  { %4313 = sst [smem:[#allocation16_spill]] %s4286_s0 }
   0x2   :  { %4314 = sst [smem:[#allocation17_spill]] %s4287_s1 }
   0x3   :  { %4315 = sst [smem:[#allocation18_spill]] %s4288_s2 }
   0x4   :  { %4316 = sst [smem:[#allocation19_spill]] %s4289_s3 }
   0x5   :  { %4317 = sst [smem:[#allocation20_spill]] %s4290_s4 }
   0x6   :  { %4318 = sst [smem:[#allocation21_spill]] %s4291_s5 }
   0x7   :  { %4319 = sst [smem:[#allocation22_spill]] %s4292_s6 }
   0x8   :  { %4320 = sst [smem:[#allocation23_spill]] %s4293_s7 }
   0x9   :  { %29 = vsyncpa [#allocation7], 0 }
   0xa   :  { %30 = vsyncpa [#allocation9], 0  ;;  %s4321_s24 = sld [smem:[#allocation22_spill]]  ;;  %vm83_vm0 = vcmask 1045504   ;;  %vm76_vm1 = vcmask 48128  }
   0xb   :  { %s4322_s1 = sld [smem:[#allocation16_spill]] }
   0xc   :  { %s4323_s7 = sld [smem:[#allocation23_spill]] }
  0x10   :  { %v68_v0 = vld [vmem:[%s4321_s24] sm:$0x3f] }
  0x11   :  { %v66_v1 = vld [vmem:[%s4322_s1] sm:$0xff]  ;;  %v67_v2 = vld [vmem:[%s4322_s1 + $0x8] sm:$0xff]  ;;  %3002 = vmatprep.subr.msk.mxu0 %vm83_vm0, %v68_v0 }
  0x12   :  { %3004 = vmatprep.mubr.msk.f32.mxu0 %vm76_vm1, %v66_v1  ;;  %v3683_v3 = vld [vmem:[%s4323_s7 + $0x18] sm:$0xff]  ;;  %3003 = vmatpush3.msk.msra.mxu0 %vm83_vm0, %v68_v0 }
  0x13   :  { %31 = vsyncpa [#allocation12], 0  ;;  %3005 = vmatmul.mubr.msk.f32.vlgmr.msra.gmra.mxu0 %vm76_vm1, %v67_v2  ;;  %v3541_v4 = vmov 0.0   ;;  %v3690_v5 = vld [vmem:[%s4323_s7 + $0x10] sm:$0xff]  ;;  %vm3542_vm2 = vmmov 0   ;;  %v3699_v6 = vld [vmem:[%s4323_s7 + $0x8] sm:$0xff] }
  0x14   :  { %3012 = vmatprep.subr.mxu0 %v3541_v4  ;;  %3020 = vmatprep.mubr.msk.f32.mxu0 %vm3542_vm2, %v3541_v4  ;;  %v3706_v7 = vld [vmem:[%s4323_s7] sm:$0xff]  ;;  %s4324_s5 = sld [smem:[#allocation18_spill]]  ;;  %vm279_vm3 = vcmask 261120   ;;  %s3543_s2 = smov 64   ;;  %vm181_vm4 = vcmask 1041408   ;;  %vm174_vm5 = vcmask 15360  }
  0x15   :  { %3013 = vmatpush3.msra.mxu0 %v3683_v3  ;;  %v2810_v9 = vld [vmem:[%s4294_s8] ss:$0 sm:$0xff]  ;;  %s4325_s28 = sld [smem:[#allocation19_spill]]  ;;  %s3544_s8 = smov 32   ;;  %v3742_v33 = vld [vmem:[%s4296_s10 + $0x18] sm:$0xff]  ;;  %v3753_v35 = vld [vmem:[%s4297_s11 + $0x10] sm:$0xff] }
  0x16   :  { %3014 = vmatprep.subr.mxu0 %v3541_v4  ;;  %v166_v30 = vld [vmem:[%s4295_s9] sm:$0x3]  ;;  %s4326_s30 = sld [smem:[#allocation17_spill]]  ;;  %v3747_v34 = vld [vmem:[%s4297_s11 + $0x18] sm:$0xff]  ;;  %v3759_v36 = vld [vmem:[%s4296_s10 + $0x10] sm:$0xff]  ;;  %vm562_vm6 = vcmask 254976  }
  0x17   :  { %3015 = vmatpush3.msra.mxu0 %v3690_v5  ;;  %3007 = vmatprep.subr.msk.mxu1 %vm181_vm4, %v166_v30  ;;  %v3767_v37 = vld [vmem:[%s4296_s10 + $0x8] sm:$0xff]  ;;  %v3781_v39 = vld [vmem:[%s4296_s10] sm:$0xff]  ;;  %s4327_s9 = sld [smem:[#allocation20_spill]]  ;;  %vm2710_vm7 = vcmask 39936   ;;  %vm2718_vm9 = vcmask 23552   ;;  %s3547_s27 = smov [#allocation6]  }
  0x18   :  { %3016 = vmatprep.subr.mxu0 %v3541_v4  ;;  %3008 = vmatpush3.msk.msra.mxu1 %vm181_vm4, %v166_v30  ;;  %v3773_v38 = vld [vmem:[%s4297_s11 + $0x8] sm:$0xff]  ;;  %v3795_v41 = vld [vmem:[%s4297_s11] sm:$0xff]  ;;  %s4328_s3 = sld [smem:[#allocation21_spill]] }
  0x19   :  { %3017 = vmatpush3.msra.mxu0 %v3699_v6  ;;  %3023 = vmatprep.subr.mxu1 %v3541_v4  ;;  %v2814_v46 = vld [vmem:[%s4298_s12] ss:$0 sm:$0xff] }
  0x1a   :  { %v274_v8 = vld [vmem:[%s4324_s5] sm:$0x3]  ;;  %3018 = vmatprep.subr.mxu0 %v3541_v4 }
  0x1b   :  { %3019 = vmatpush3.msra.mxu0 %v3706_v7  ;;  %v275_v19 = vld [vmem:[%s4325_s28] sm:$0x3]  ;;  %s2755_s28 = sshll.u32 %s3547_s27, 4  ;;  %s2756_s28 = int_to_ptr.vmem [resolvable:$true] %s2755_s28 }
  0x1c   :  { %3021 = vmatmul.mubr.msk.f32.vlgmr.msra.gmra.mxu0 %vm279_vm3, %v274_v8  ;;  %3034 = vmatprep.subr.mxu0 %v3541_v4  ;;  %v164_v31 = vld [vmem:[%s4326_s30] sm:$0xff]  ;;  %v165_v32 = vld [vmem:[%s4326_s30 + $0x8] sm:$0xff] }
  0x1d   :  { %3042 = vmatprep.mubr.msk.f32.mxu0 %vm3542_vm2, %v3541_v4  ;;  %3009 = vmatprep.mubr.msk.f32.mxu1 %vm174_vm5, %v164_v31  ;;  %v276_v42 = vld [vmem:[%s4327_s9] sm:$0x3] }
  0x1e   :  { %3035 = vmatpush3.msra.mxu0 %v3747_v34  ;;  %3010 = vmatmul.mubr.msk.f32.vlgmr.msra.gmra.mxu1 %vm174_vm5, %v165_v32  ;;  %v277_v63 = vld [vmem:[%s4328_s3] sm:$0x3] }
  0x1f   :  { %3024 = vmatpush3.msra.mxu1 %v3742_v33  ;;  %3036 = vmatprep.subr.mxu0 %v3541_v4 }
  0x20   :  { %3025 = vmatprep.subr.mxu1 %v3541_v4  ;;  %3037 = vmatpush3.msra.mxu0 %v3753_v35 }
  0x21   :  { %3026 = vmatpush3.msra.mxu1 %v3759_v36  ;;  %3038 = vmatprep.subr.mxu0 %v3541_v4 }
  0x22   :  { %3027 = vmatprep.subr.mxu1 %v3541_v4  ;;  %3031 = vmatprep.mubr.msk.f32.mxu1 %vm3542_vm2, %v3541_v4 }
  0x23   :  { %3028 = vmatpush3.msra.mxu1 %v3767_v37  ;;  %3039 = vmatpush3.msra.mxu0 %v3773_v38 }
  0x24   :  { %3029 = vmatprep.subr.mxu1 %v3541_v4  ;;  %3040 = vmatprep.subr.mxu0 %v3541_v4 }
  0x25   :  { %3030 = vmatpush3.msra.mxu1 %v3781_v39  ;;  %3041 = vmatpush3.msra.mxu0 %v3795_v41 }
  0x26   :  { %3045 = vmatprep.subr.mxu1 %v3541_v4  ;;  %3043 = vmatmul.mubr.msk.f32.vlgmr.msra.gmra.mxu0 %vm279_vm3, %v276_v42 }
  0x27   :  { %3056 = vmatprep.subr.mxu0 %v3541_v4  ;;  %3064 = vmatprep.mubr.msk.f32.mxu0 %vm3542_vm2, %v3541_v4 }
  0x28   :  { %3057 = vmatpush3.msra.mxu0 %v3742_v33 }
  0x29   :  { %3058 = vmatprep.subr.mxu0 %v3541_v4 }
  0x2a   :  { %3059 = vmatpush3.msra.mxu0 %v3759_v36 }
  0x2b   :  { %3060 = vmatprep.subr.mxu0 %v3541_v4 }
  0x2c   :  { %3061 = vmatpush3.msra.mxu0 %v3767_v37 }
  0x2d   :  { %3062 = vmatprep.subr.mxu0 %v3541_v4 }
  0x2e   :  { %3063 = vmatpush3.msra.mxu0 %v3781_v39 }
  0x2f   :  { %3078 = vmatprep.subr.mxu0 %v3541_v4 }
  0xd3   :  { %v3006_v10 = vpop.f32.mrf.mxu0 }
  0xd4   :  { %v159_v11 = vadd.f32 %v3006_v10, %v2810_v9 }
  0xd5   :  { %v153_v12 = vpop.f32.mrf.mxu0 }
  0xd6   :  { %163 = vst [vmem:[#allocation2 + $0x8] sm:$0xff] %v159_v11  ;;  %v154_v13 = vadd.f32 %v2810_v9, %v153_v12 }
  0xd8   :  { %162 = vst [vmem:[#allocation2] sm:$0xff] %v154_v13 }
  0xdc   :  { %v349_v14 = vpop.f32.mrf.mxu0 }
  0xde   :  { %v3022_v15 = vpop.f32.mrf.mxu0  ;;  %v3011_v45 = vpop.f32.mrf.mxu1 }
  0xdf   :  { %v278_v16 = vld [vmem:[#allocation2] sm:$0x3]  ;;  %v257_v47 = vadd.f32 %v3011_v45, %v2814_v46  ;;  %v569_v58 = vld [vmem:[#allocation2 + $0x2] sm:$0x3] }
  0xe0   :  { %v353_v17 = vadd.f32 %v349_v14, %v278_v16  ;;  %v251_v48 = vpop.f32.mrf.mxu1 }
  0xe1   :  { %261 = vst [vmem:[#allocation3 + $0x8] sm:$0xff] %v257_v47  ;;  %v252_v49 = vadd.f32 %v2814_v46, %v251_v48  ;;  %v846_v48 = vld [vmem:[#allocation2 + $0x4] sm:$0x3] }
  0xe2   :  { %3307 = vtanh.f32 %v353_v17  ;;  %v2819_v20 = vmul.f32 -1.442695, %v353_v17 }
  0xe3   :  { %260 = vst [vmem:[#allocation3] sm:$0xff] %v252_v49 }
  0xe4   :  { %3309 = vpow2.f32 %v2819_v20 }
  0xe6   :  { %v528_v51 = vpop.f32.mrf.mxu0 }
  0xe8   :  { %v3044_v52 = vpop.f32.mrf.mxu0 }
  0xea   :  { %v382_v53 = vld [vmem:[#allocation3] sm:$0x3]  ;;  %v665_v42 = vld [vmem:[#allocation3 + $0x2] sm:$0x3] }
  0xef   :  { %v3308_v18 = vpop.eup %3307 }
  0xf0   :  { %367 = vrot.lane.b32.xlu0 %v3308_v18, %s3543_s2 }
  0xf1   :  { %v3310_v21 = vpop.eup %3309 }
  0xf2   :  { %v357_v22 = vadd.f32 1.0, %v3310_v21 }
  0xf4   :  { %361 = vrot.lane.b32.xlu0 %v275_v19, %s3544_s8  ;;  %3311 = vrcp.f32 %v357_v22 }
 0x101   :  { %v3312_v23 = vpop.eup %3311 }
 0x162   :  { %v368_v24 = vpop.permute.xlu0 %367 }
 0x163   :  { %v370_v25 = vmul.f32 %v3312_v23, %v368_v24 }
 0x165   :  { %372 = vrot.lane.b32.xlu1 %v370_v25, %s3544_s8 }
 0x166   :  { %v362_v26 = vpop.permute.xlu0 %361 }
 0x167   :  { %v364_v27 = vmul.f32 %v3312_v23, %v362_v26 }
 0x1d7   :  { %v373_v28 = vpop.permute.xlu1 %372 }
 0x1d8   :  { %v3727_v29 = vadd.f32 %v373_v28, %v364_v27 }
 0x1da   :  { %3313 = vtanh.f32 %v3727_v29 }
 0x1e7   :  { %v3314_v40 = vpop.eup %3313 }
 0x1e8   :  { %378 = vrot.lane.b32.xlu1 %v3314_v40, %s3543_s2 }
 0x25a   :  { %v379_v43 = vpop.permute.xlu1 %378 }
 0x25b   :  { %v381_v44 = vmul.f32 %v3312_v23, %v379_v43 }
 0x25d   :  { %384 = vrot.lane.b32.xlu0 %v381_v44, %s3544_s8 }
 0x2cf   :  { %v385_v50 = vpop.permute.xlu0 %384 }
 0x2d0   :  { %563 = vst.msk [vmem:[#allocation4] sm:$0x3] %vm562_vm6, %v385_v50  ;;  %3032 = vmatmul.mubr.msk.f32.vlgmr.msra.gmra.mxu1 %vm279_vm3, %v385_v50 }
 0x2d1   :  { %3046 = vmatpush3.msra.mxu1 %v3683_v3  ;;  %3053 = vmatprep.mubr.msk.f32.mxu1 %vm3542_vm2, %v3541_v4 }
 0x2d2   :  { %3047 = vmatprep.subr.mxu1 %v3541_v4 }
 0x2d3   :  { %3048 = vmatpush3.msra.mxu1 %v3690_v5 }
 0x2d4   :  { %3049 = vmatprep.subr.mxu1 %v3541_v4 }
 0x2d5   :  { %3050 = vmatpush3.msra.mxu1 %v3699_v6 }
 0x2d6   :  { %3051 = vmatprep.subr.mxu1 %v3541_v4 }
 0x2d7   :  { %3052 = vmatpush3.msra.mxu1 %v3706_v7 }
 0x2d8   :  { %3054 = vmatmul.mubr.msk.f32.vlgmr.msra.gmra.mxu1 %vm279_vm3, %v385_v50  ;;  %3067 = vmatprep.subr.mxu1 %v3541_v4 }
 0x2d9   :  { %3068 = vmatpush3.msra.mxu1 %v3747_v34  ;;  %3075 = vmatprep.mubr.msk.f32.mxu1 %vm3542_vm2, %v3541_v4 }
 0x2da   :  { %3069 = vmatprep.subr.mxu1 %v3541_v4 }
 0x2db   :  { %3070 = vmatpush3.msra.mxu1 %v3753_v35 }
 0x2dc   :  { %3071 = vmatprep.subr.mxu1 %v3541_v4 }
 0x2dd   :  { %3072 = vmatpush3.msra.mxu1 %v3773_v38 }
 0x2de   :  { %3073 = vmatprep.subr.mxu1 %v3541_v4 }
 0x2df   :  { %3074 = vmatpush3.msra.mxu1 %v3795_v41 }
 0x2e0   :  { %3089 = vmatprep.subr.mxu1 %v3541_v4 }
 0x390   :  { %v454_v54 = vpop.f32.mrf.mxu1 }
 0x391   :  { %v458_v55 = vadd.f32 %v454_v54, %v382_v53 }
 0x392   :  { %v3033_v56 = vpop.f32.mrf.mxu1 }
 0x393   :  { %v532_v57 = vadd.f32 %v528_v51, %v458_v55 }
 0x395   :  { %3315 = vtanh.f32 %v532_v57  ;;  %v2822_v2 = vmul.f32 -1.442695, %v532_v57 }
 0x398   :  { %v636_v59 = vpop.f32.mrf.mxu1 }
 0x399   :  { %v640_v60 = vadd.f32 %v636_v59, %v569_v58 }
 0x39a   :  { %v3055_v61 = vpop.f32.mrf.mxu1 }
 0x39b   :  { %3317 = vtanh.f32 %v640_v60  ;;  %v2824_v1 = vmul.f32 -1.442695, %v640_v60 }
 0x39d   :  { %3319 = vpow2.f32 %v2824_v1 }
 0x39e   :  { %3321 = vpow2.f32 %v2822_v2 }
 0x3a2   :  { %v3316_v62 = vpop.eup %3315 }
 0x3a3   :  { %546 = vrot.lane.b32.xlu0 %v3316_v62, %s3543_s2 }
 0x3a7   :  { %540 = vrot.lane.b32.xlu0 %v277_v63, %s3544_s8 }
 0x3a8   :  { %v3318_v0 = vpop.eup %3317 }
 0x3a9   :  { %650 = vrot.lane.b32.xlu1 %v3318_v0, %s3543_s2 }
 0x3aa   :  { %v3320_v8 = vpop.eup %3319 }
 0x3ab   :  { %v644_v9 = vadd.f32 1.0, %v3320_v8  ;;  %v3322_v10 = vpop.eup %3321 }
 0x3ac   :  { %v536_v11 = vadd.f32 1.0, %v3322_v10 }
 0x3ad   :  { %3323 = vrcp.f32 %v644_v9 }
 0x3ae   :  { %3325 = vrcp.f32 %v536_v11 }
 0x3ba   :  { %v3324_v12 = vpop.eup %3323 }
 0x3bb   :  { %v3326_v16 = vpop.eup %3325  ;;  %v647_v18 = vmul.f32 %v3324_v12, %v3727_v29 }
 0x415   :  { %v547_v15 = vpop.permute.xlu0 %546 }
 0x416   :  { %v549_v17 = vmul.f32 %v3326_v16, %v547_v15 }
 0x419   :  { %v541_v19 = vpop.permute.xlu0 %540 }
 0x41a   :  { %v543_v22 = vmul.f32 %v3326_v16, %v541_v19 }
 0x41b   :  { %v651_v13 = vpop.permute.xlu1 %650 }
 0x41c   :  { %v653_v14 = vmul.f32 %v3324_v12, %v651_v13 }
 0x41e   :  { %655 = vrot.lane.b32.xlu1 %v653_v14, %s3544_s8 }
 0x422   :  { %551 = vrot.lane.b32.xlu1 %v549_v17, %s3544_s8 }
 0x490   :  { %v656_v20 = vpop.permute.xlu1 %655 }
 0x491   :  { %v3849_v21 = vadd.f32 %v656_v20, %v647_v18 }
 0x493   :  { %3327 = vtanh.f32 %v3849_v21 }
 0x494   :  { %v552_v23 = vpop.permute.xlu1 %551 }
 0x495   :  { %v3852_v24 = vadd.f32 %v552_v23, %v543_v22  ;;  %v942_v23 = vld [vmem:[#allocation3 + $0x4] sm:$0x3] }
 0x497   :  { %3329 = vtanh.f32 %v3852_v24 }
 0x4a0   :  { %v3328_v25 = vpop.eup %3327 }
 0x4a1   :  { %661 = vrot.lane.b32.xlu0 %v3328_v25, %s3543_s2 }
 0x4a4   :  { %v3330_v26 = vpop.eup %3329 }
 0x4a5   :  { %557 = vrot.lane.b32.xlu1 %v3330_v26, %s3543_s2 }
 0x513   :  { %v662_v27 = vpop.permute.xlu0 %661 }
 0x514   :  { %v664_v28 = vmul.f32 %v3324_v12, %v662_v27 }
 0x516   :  { %667 = vrot.lane.b32.xlu0 %v664_v28, %s3544_s8  ;;  %v1123_v28 = vld [vmem:[#allocation2 + $0x6] sm:$0x3] }
 0x517   :  { %v558_v29 = vpop.permute.xlu1 %557 }
 0x518   :  { %v560_v30 = vmul.f32 %v3326_v16, %v558_v29 }
 0x51a   :  { %565 = vrot.lane.b32.xlu1 %v560_v30, %s3544_s8 }
 0x588   :  { %v668_v31 = vpop.permute.xlu0 %667 }
 0x589   :  { %840 = vst.msk [vmem:[#allocation4 + $0x2] sm:$0x3] %vm562_vm6, %v668_v31  ;;  %3065 = vmatmul.mubr.msk.f32.vlgmr.msra.gmra.mxu0 %vm279_vm3, %v668_v31 }
 0x58a   :  { %3079 = vmatpush3.msra.mxu0 %v3683_v3  ;;  %3086 = vmatprep.mubr.msk.f32.mxu0 %vm3542_vm2, %v3541_v4 }
 0x58b   :  { %3080 = vmatprep.subr.mxu0 %v3541_v4 }
 0x58c   :  { %3081 = vmatpush3.msra.mxu0 %v3690_v5  ;;  %v566_v32 = vpop.permute.xlu1 %565 }
 0x58d   :  { %568 = vst.msk [vmem:[#allocation5] sm:$0x3] %vm562_vm6, %v566_v32  ;;  %3082 = vmatprep.subr.mxu0 %v3541_v4  ;;  %3076 = vmatmul.mubr.msk.f32.vlgmr.msra.gmra.mxu1 %vm279_vm3, %v566_v32 }
 0x58e   :  { %3083 = vmatpush3.msra.mxu0 %v3699_v6  ;;  %3090 = vmatpush3.msra.mxu1 %v3742_v33 }
 0x58f   :  { %3084 = vmatprep.subr.mxu0 %v3541_v4  ;;  %3091 = vmatprep.subr.mxu1 %v3541_v4 }
 0x590   :  { %3085 = vmatpush3.msra.mxu0 %v3706_v7  ;;  %3092 = vmatpush3.msra.mxu1 %v3759_v36 }
 0x591   :  { %3087 = vmatmul.mubr.msk.f32.vlgmr.msra.gmra.mxu0 %vm279_vm3, %v668_v31  ;;  %3100 = vmatprep.subr.mxu0 %v3541_v4 }
 0x592   :  { %3101 = vmatpush3.msra.mxu0 %v3747_v34  ;;  %3093 = vmatprep.subr.mxu1 %v3541_v4 }
 0x593   :  { %3102 = vmatprep.subr.mxu0 %v3541_v4  ;;  %3094 = vmatpush3.msra.mxu1 %v3767_v37 }
 0x594   :  { %3103 = vmatpush3.msra.mxu0 %v3753_v35  ;;  %3108 = vmatprep.mubr.msk.f32.mxu0 %vm3542_vm2, %v3541_v4 }
 0x595   :  { %3104 = vmatprep.subr.mxu0 %v3541_v4  ;;  %3095 = vmatprep.subr.mxu1 %v3541_v4 }
 0x596   :  { %3105 = vmatpush3.msra.mxu0 %v3773_v38  ;;  %3096 = vmatpush3.msra.mxu1 %v3781_v39 }
 0x597   :  { %3106 = vmatprep.subr.mxu0 %v3541_v4  ;;  %3097 = vmatprep.mubr.msk.f32.mxu1 %vm3542_vm2, %v3541_v4 }
 0x598   :  { %3107 = vmatpush3.msra.mxu0 %v3795_v41  ;;  %3111 = vmatprep.subr.mxu1 %v3541_v4 }
 0x599   :  { %3122 = vmatprep.subr.mxu0 %v3541_v4 }
 0x649   :  { %v737_v40 = vpop.f32.mrf.mxu0 }
 0x64a   :  { %v741_v44 = vadd.f32 %v737_v40, %v665_v42 }
 0x64b   :  { %v3066_v43 = vpop.f32.mrf.mxu0 }
 0x64d   :  { %v810_v45 = vpop.f32.mrf.mxu1 }
 0x64e   :  { %v814_v46 = vadd.f32 %v810_v45, %v741_v44 }
 0x64f   :  { %v3077_v47 = vpop.f32.mrf.mxu1 }
 0x650   :  { %3331 = vtanh.f32 %v814_v46  ;;  %v2827_v54 = vmul.f32 -1.442695, %v814_v46 }
 0x651   :  { %v913_v49 = vpop.f32.mrf.mxu0 }
 0x652   :  { %v917_v50 = vadd.f32 %v913_v49, %v846_v48 }
 0x653   :  { %v3088_v51 = vpop.f32.mrf.mxu0 }
 0x654   :  { %3333 = vtanh.f32 %v917_v50  ;;  %v2829_v55 = vmul.f32 -1.442695, %v917_v50 }
 0x655   :  { %3335 = vpow2.f32 %v2827_v54 }
 0x656   :  { %3337 = vpow2.f32 %v2829_v55 }
 0x65d   :  { %v3332_v52 = vpop.eup %3331 }
 0x65e   :  { %824 = vrot.lane.b32.xlu1 %v3332_v52, %s3543_s2 }
 0x661   :  { %v3334_v53 = vpop.eup %3333 }
 0x662   :  { %927 = vrot.lane.b32.xlu0 %v3334_v53, %s3543_s2  ;;  %v3336_v56 = vpop.eup %3335 }
 0x663   :  { %v818_v57 = vadd.f32 1.0, %v3336_v56  ;;  %v3338_v58 = vpop.eup %3337 }
 0x664   :  { %v921_v59 = vadd.f32 1.0, %v3338_v58 }
 0x665   :  { %3339 = vrcp.f32 %v818_v57 }
 0x666   :  { %3341 = vrcp.f32 %v921_v59 }
 0x672   :  { %v3340_v60 = vpop.eup %3339 }
 0x673   :  { %v3342_v63 = vpop.eup %3341  ;;  %v821_v2 = vmul.f32 %v3340_v60, %v3852_v24 }
 0x674   :  { %v924_v10 = vmul.f32 %v3342_v63, %v3849_v21 }
 0x6d0   :  { %v825_v61 = vpop.permute.xlu1 %824 }
 0x6d1   :  { %v827_v62 = vmul.f32 %v3340_v60, %v825_v61 }
 0x6d3   :  { %829 = vrot.lane.b32.xlu1 %v827_v62, %s3544_s8 }
 0x6d4   :  { %v928_v0 = vpop.permute.xlu0 %927 }
 0x6d5   :  { %v930_v1 = vmul.f32 %v3342_v63, %v928_v0 }
 0x6d7   :  { %932 = vrot.lane.b32.xlu0 %v930_v1, %s3544_s8 }
 0x745   :  { %v830_v8 = vpop.permute.xlu1 %829 }
 0x746   :  { %v3899_v9 = vadd.f32 %v830_v8, %v821_v2 }
 0x748   :  { %3343 = vtanh.f32 %v3899_v9 }
 0x749   :  { %v933_v11 = vpop.permute.xlu0 %932 }
 0x74a   :  { %v3903_v12 = vadd.f32 %v933_v11, %v924_v10  ;;  %v1219_v11 = vld [vmem:[#allocation3 + $0x6] sm:$0x3] }
 0x74c   :  { %3345 = vtanh.f32 %v3903_v12 }
 0x755   :  { %v3344_v13 = vpop.eup %3343 }
 0x756   :  { %835 = vrot.lane.b32.xlu1 %v3344_v13, %s3543_s2 }
 0x759   :  { %v3346_v14 = vpop.eup %3345 }
 0x75a   :  { %938 = vrot.lane.b32.xlu0 %v3346_v14, %s3543_s2 }
 0x7c8   :  { %v836_v15 = vpop.permute.xlu1 %835 }
 0x7c9   :  { %v838_v16 = vmul.f32 %v3340_v60, %v836_v15 }
 0x7cb   :  { %842 = vrot.lane.b32.xlu1 %v838_v16, %s3544_s8  ;;  %v1400_v16 = vld [vmem:[#allocation2 + $0x8] sm:$0x3] }
 0x7cc   :  { %v939_v17 = vpop.permute.xlu0 %938 }
 0x7cd   :  { %v941_v18 = vmul.f32 %v3342_v63, %v939_v17 }
 0x7cf   :  { %944 = vrot.lane.b32.xlu0 %v941_v18, %s3544_s8 }
 0x83d   :  { %v843_v19 = vpop.permute.xlu1 %842 }
 0x83e   :  { %845 = vst.msk [vmem:[#allocation5 + $0x2] sm:$0x3] %vm562_vm6, %v843_v19  ;;  %3109 = vmatmul.mubr.msk.f32.vlgmr.msra.gmra.mxu0 %vm279_vm3, %v843_v19 }
 0x83f   :  { %3123 = vmatpush3.msra.mxu0 %v3742_v33  ;;  %3130 = vmatprep.mubr.msk.f32.mxu0 %vm3542_vm2, %v3541_v4 }
 0x840   :  { %3124 = vmatprep.subr.mxu0 %v3541_v4 }
 0x841   :  { %v945_v20 = vpop.permute.xlu0 %944  ;;  %3125 = vmatpush3.msra.mxu0 %v3759_v36 }
 0x842   :  { %1117 = vst.msk [vmem:[#allocation4 + $0x4] sm:$0x3] %vm562_vm6, %v945_v20  ;;  %3098 = vmatmul.mubr.msk.f32.vlgmr.msra.gmra.mxu1 %vm279_vm3, %v945_v20  ;;  %3126 = vmatprep.subr.mxu0 %v3541_v4 }
 0x843   :  { %3112 = vmatpush3.msra.mxu1 %v3683_v3  ;;  %3119 = vmatprep.mubr.msk.f32.mxu1 %vm3542_vm2, %v3541_v4 }
 0x844   :  { %3113 = vmatprep.subr.mxu1 %v3541_v4  ;;  %3127 = vmatpush3.msra.mxu0 %v3767_v37 }
 0x845   :  { %3114 = vmatpush3.msra.mxu1 %v3690_v5  ;;  %3128 = vmatprep.subr.mxu0 %v3541_v4 }
 0x846   :  { %3115 = vmatprep.subr.mxu1 %v3541_v4  ;;  %3129 = vmatpush3.msra.mxu0 %v3781_v39 }
 0x847   :  { %3116 = vmatpush3.msra.mxu1 %v3699_v6  ;;  %3144 = vmatprep.subr.mxu0 %v3541_v4 }
 0x848   :  { %3117 = vmatprep.subr.mxu1 %v3541_v4 }
 0x849   :  { %3118 = vmatpush3.msra.mxu1 %v3706_v7 }
 0x84a   :  { %3120 = vmatmul.mubr.msk.f32.vlgmr.msra.gmra.mxu1 %vm279_vm3, %v945_v20  ;;  %3133 = vmatprep.subr.mxu1 %v3541_v4 }
 0x84b   :  { %3134 = vmatpush3.msra.mxu1 %v3747_v34  ;;  %3141 = vmatprep.mubr.msk.f32.mxu1 %vm3542_vm2, %v3541_v4 }
 0x84c   :  { %3135 = vmatprep.subr.mxu1 %v3541_v4 }
 0x84d   :  { %3136 = vmatpush3.msra.mxu1 %v3753_v35 }
 0x84e   :  { %3137 = vmatprep.subr.mxu1 %v3541_v4 }
 0x84f   :  { %3138 = vmatpush3.msra.mxu1 %v3773_v38 }
 0x850   :  { %3139 = vmatprep.subr.mxu1 %v3541_v4 }
 0x851   :  { %3140 = vmatpush3.msra.mxu1 %v3795_v41 }
 0x852   :  { %3155 = vmatprep.subr.mxu1 %v3541_v4 }
 0x8fe   :  { %v1087_v21 = vpop.f32.mrf.mxu0 }
 0x900   :  { %v3110_v22 = vpop.f32.mrf.mxu0 }
 0x902   :  { %v1014_v24 = vpop.f32.mrf.mxu1 }
 0x903   :  { %v1018_v25 = vadd.f32 %v1014_v24, %v942_v23 }
 0x904   :  { %v3099_v26 = vpop.f32.mrf.mxu1 }
 0x905   :  { %v1091_v27 = vadd.f32 %v1087_v21, %v1018_v25 }
 0x907   :  { %3347 = vtanh.f32 %v1091_v27  ;;  %v2832_v42 = vmul.f32 -1.442695, %v1091_v27 }
 0x90a   :  { %v1190_v29 = vpop.f32.mrf.mxu1 }
 0x90b   :  { %v1194_v30 = vadd.f32 %v1190_v29, %v1123_v28 }
 0x90c   :  { %v3121_v31 = vpop.f32.mrf.mxu1 }
 0x90d   :  { %3349 = vtanh.f32 %v1194_v30  ;;  %v2834_v43 = vmul.f32 -1.442695, %v1194_v30 }
 0x90e   :  { %3351 = vpow2.f32 %v2832_v42 }
 0x90f   :  { %3353 = vpow2.f32 %v2834_v43 }
 0x914   :  { %v3348_v32 = vpop.eup %3347 }
 0x915   :  { %1101 = vrot.lane.b32.xlu1 %v3348_v32, %s3543_s2 }
 0x91a   :  { %v3350_v40 = vpop.eup %3349 }
 0x91b   :  { %1204 = vrot.lane.b32.xlu0 %v3350_v40, %s3543_s2  ;;  %v3352_v44 = vpop.eup %3351 }
 0x91c   :  { %v1095_v45 = vadd.f32 1.0, %v3352_v44  ;;  %v3354_v46 = vpop.eup %3353 }
 0x91d   :  { %v1198_v47 = vadd.f32 1.0, %v3354_v46 }
 0x91e   :  { %3355 = vrcp.f32 %v1095_v45 }
 0x91f   :  { %3357 = vrcp.f32 %v1198_v47 }
 0x92b   :  { %v3356_v48 = vpop.eup %3355 }
 0x92c   :  { %v3358_v51 = vpop.eup %3357  ;;  %v1098_v54 = vmul.f32 %v3356_v48, %v3899_v9 }
 0x92d   :  { %v1201_v57 = vmul.f32 %v3358_v51, %v3903_v12 }
 0x987   :  { %v1102_v49 = vpop.permute.xlu1 %1101 }
 0x988   :  { %v1104_v50 = vmul.f32 %v3356_v48, %v1102_v49 }
 0x98a   :  { %1106 = vrot.lane.b32.xlu1 %v1104_v50, %s3544_s8 }
 0x98d   :  { %v1205_v52 = vpop.permute.xlu0 %1204 }
 0x98e   :  { %v1207_v53 = vmul.f32 %v3358_v51, %v1205_v52 }
 0x990   :  { %1209 = vrot.lane.b32.xlu0 %v1207_v53, %s3544_s8 }
 0x9fc   :  { %v1107_v55 = vpop.permute.xlu1 %1106 }
 0x9fd   :  { %v3950_v56 = vadd.f32 %v1107_v55, %v1098_v54 }
 0x9ff   :  { %3359 = vtanh.f32 %v3950_v56 }
 0xa02   :  { %v1210_v58 = vpop.permute.xlu0 %1209 }
 0xa03   :  { %v3954_v59 = vadd.f32 %v1210_v58, %v1201_v57 }
 0xa05   :  { %3361 = vtanh.f32 %v3954_v59 }
 0xa0c   :  { %v3360_v60 = vpop.eup %3359 }
 0xa0d   :  { %1112 = vrot.lane.b32.xlu1 %v3360_v60, %s3543_s2 }
 0xa12   :  { %v3362_v61 = vpop.eup %3361 }
 0xa13   :  { %1215 = vrot.lane.b32.xlu0 %v3362_v61, %s3543_s2 }
 0xa7f   :  { %v1113_v62 = vpop.permute.xlu1 %1112 }
 0xa80   :  { %v1115_v63 = vmul.f32 %v3356_v48, %v1113_v62 }
 0xa82   :  { %1119 = vrot.lane.b32.xlu1 %v1115_v63, %s3544_s8 }
 0xa85   :  { %v1216_v0 = vpop.permute.xlu0 %1215 }
 0xa86   :  { %v1218_v1 = vmul.f32 %v3358_v51, %v1216_v0 }
 0xa88   :  { %1221 = vrot.lane.b32.xlu0 %v1218_v1, %s3544_s8 }
 0xaf4   :  { %v1120_v2 = vpop.permute.xlu1 %1119 }
 0xaf5   :  { %1122 = vst.msk [vmem:[#allocation5 + $0x4] sm:$0x3] %vm562_vm6, %v1120_v2  ;;  %3142 = vmatmul.mubr.msk.f32.vlgmr.msra.gmra.mxu1 %vm279_vm3, %v1120_v2 }
 0xaf6   :  { %3156 = vmatpush3.msra.mxu1 %v3742_v33  ;;  %3163 = vmatprep.mubr.msk.f32.mxu1 %vm3542_vm2, %v3541_v4 }
 0xaf7   :  { %3157 = vmatprep.subr.mxu1 %v3541_v4 }
 0xaf8   :  { %3158 = vmatpush3.msra.mxu1 %v3759_v36 }
 0xaf9   :  { %3159 = vmatprep.subr.mxu1 %v3541_v4 }
 0xafa   :  { %v1222_v8 = vpop.permute.xlu0 %1221  ;;  %3160 = vmatpush3.msra.mxu1 %v3767_v37 }
 0xafb   :  { %1394 = vst.msk [vmem:[#allocation4 + $0x6] sm:$0x3] %vm562_vm6, %v1222_v8  ;;  %3131 = vmatmul.mubr.msk.f32.vlgmr.msra.gmra.mxu0 %vm279_vm3, %v1222_v8  ;;  %3161 = vmatprep.subr.mxu1 %v3541_v4 }
 0xafc   :  { %3145 = vmatpush3.msra.mxu0 %v3683_v3  ;;  %3152 = vmatprep.mubr.msk.f32.mxu0 %vm3542_vm2, %v3541_v4 }
 0xafd   :  { %3146 = vmatprep.subr.mxu0 %v3541_v4  ;;  %3162 = vmatpush3.msra.mxu1 %v3781_v39 }
 0xafe   :  { %3147 = vmatpush3.msra.mxu0 %v3690_v5  ;;  %3177 = vmatprep.subr.mxu1 %v3541_v4 }
 0xaff   :  { %3148 = vmatprep.subr.mxu0 %v3541_v4 }
 0xb00   :  { %3149 = vmatpush3.msra.mxu0 %v3699_v6 }
 0xb01   :  { %3150 = vmatprep.subr.mxu0 %v3541_v4 }
 0xb02   :  { %3151 = vmatpush3.msra.mxu0 %v3706_v7 }
 0xb03   :  { %3153 = vmatmul.mubr.msk.f32.vlgmr.msra.gmra.mxu0 %vm279_vm3, %v1222_v8  ;;  %3166 = vmatprep.subr.mxu0 %v3541_v4 }
 0xb04   :  { %3167 = vmatpush3.msra.mxu0 %v3747_v34  ;;  %3174 = vmatprep.mubr.msk.f32.mxu0 %vm3542_vm2, %v3541_v4 }
 0xb05   :  { %3168 = vmatprep.subr.mxu0 %v3541_v4 }
 0xb06   :  { %3169 = vmatpush3.msra.mxu0 %v3753_v35 }
 0xb07   :  { %3170 = vmatprep.subr.mxu0 %v3541_v4 }
 0xb08   :  { %3171 = vmatpush3.msra.mxu0 %v3773_v38 }
 0xb09   :  { %3172 = vmatprep.subr.mxu0 %v3541_v4 }
 0xb0a   :  { %3173 = vmatpush3.msra.mxu0 %v3795_v41 }
 0xb0b   :  { %3188 = vmatprep.subr.mxu0 %v3541_v4 }
 0xbb5   :  { %v1364_v9 = vpop.f32.mrf.mxu1 }
 0xbb7   :  { %v3143_v10 = vpop.f32.mrf.mxu1 }
 0xbbb   :  { %v1291_v12 = vpop.f32.mrf.mxu0 }
 0xbbc   :  { %v1295_v13 = vadd.f32 %v1291_v12, %v1219_v11 }
 0xbbd   :  { %v3132_v14 = vpop.f32.mrf.mxu0 }
 0xbbe   :  { %v1368_v15 = vadd.f32 %v1364_v9, %v1295_v13 }
 0xbc0   :  { %3363 = vtanh.f32 %v1368_v15  ;;  %v2837_v22 = vmul.f32 -1.442695, %v1368_v15 }
 0xbc3   :  { %v1467_v17 = vpop.f32.mrf.mxu0 }
 0xbc4   :  { %v1471_v18 = vadd.f32 %v1467_v17, %v1400_v16 }
 0xbc5   :  { %v3154_v19 = vpop.f32.mrf.mxu0 }
 0xbc6   :  { %3365 = vtanh.f32 %v1471_v18  ;;  %v2839_v23 = vmul.f32 -1.442695, %v1471_v18 }
 0xbc7   :  { %3367 = vpow2.f32 %v2837_v22 }
 0xbc8   :  { %3369 = vpow2.f32 %v2839_v23 }
 0xbcd   :  { %v3364_v20 = vpop.eup %3363 }
 0xbce   :  { %1378 = vrot.lane.b32.xlu1 %v3364_v20, %s3543_s2 }
 0xbd3   :  { %v3366_v21 = vpop.eup %3365 }
 0xbd4   :  { %1481 = vrot.lane.b32.xlu0 %v3366_v21, %s3543_s2  ;;  %v3368_v24 = vpop.eup %3367 }
 0xbd5   :  { %v1372_v25 = vadd.f32 1.0, %v3368_v24  ;;  %v3370_v26 = vpop.eup %3369 }
 0xbd6   :  { %v1475_v27 = vadd.f32 1.0, %v3370_v26 }
 0xbd7   :  { %3371 = vrcp.f32 %v1372_v25 }
 0xbd8   :  { %3373 = vrcp.f32 %v1475_v27 }
 0xbe4   :  { %v3372_v28 = vpop.eup %3371 }
 0xbe5   :  { %v3374_v31 = vpop.eup %3373  ;;  %v1375_v42 = vmul.f32 %v3372_v28, %v3950_v56 }
 0xbe6   :  { %v1478_v45 = vmul.f32 %v3374_v31, %v3954_v59  ;;  %v1677_v59 = vld [vmem:[#allocation2 + $0xa] sm:$0x3] }
 0xc40   :  { %v1379_v29 = vpop.permute.xlu1 %1378 }
 0xc41   :  { %v1381_v30 = vmul.f32 %v3372_v28, %v1379_v29 }
 0xc43   :  { %1383 = vrot.lane.b32.xlu1 %v1381_v30, %s3544_s8 }
 0xc46   :  { %v1482_v32 = vpop.permute.xlu0 %1481 }
 0xc47   :  { %v1484_v40 = vmul.f32 %v3374_v31, %v1482_v32 }
 0xc49   :  { %1486 = vrot.lane.b32.xlu0 %v1484_v40, %s3544_s8 }
 0xcb5   :  { %v1384_v43 = vpop.permute.xlu1 %1383 }
 0xcb6   :  { %v4001_v44 = vadd.f32 %v1384_v43, %v1375_v42 }
 0xcb8   :  { %3375 = vtanh.f32 %v4001_v44 }
 0xcbb   :  { %v1487_v46 = vpop.permute.xlu0 %1486 }
 0xcbc   :  { %v4005_v47 = vadd.f32 %v1487_v46, %v1478_v45  ;;  %v1954_v46 = vld [vmem:[#allocation2 + $0xc] sm:$0x3] }
 0xcbe   :  { %3377 = vtanh.f32 %v4005_v47 }
 0xcc5   :  { %v3376_v48 = vpop.eup %3375 }
 0xcc6   :  { %1389 = vrot.lane.b32.xlu1 %v3376_v48, %s3543_s2 }
 0xccb   :  { %v3378_v49 = vpop.eup %3377 }
 0xccc   :  { %1492 = vrot.lane.b32.xlu0 %v3378_v49, %s3543_s2 }
 0xd38   :  { %v1390_v50 = vpop.permute.xlu1 %1389 }
 0xd39   :  { %v1392_v51 = vmul.f32 %v3372_v28, %v1390_v50 }
 0xd3b   :  { %1396 = vrot.lane.b32.xlu1 %v1392_v51, %s3544_s8 }
 0xd3e   :  { %v1493_v52 = vpop.permute.xlu0 %1492 }
 0xd3f   :  { %v1495_v53 = vmul.f32 %v3374_v31, %v1493_v52 }
 0xd41   :  { %1498 = vrot.lane.b32.xlu0 %v1495_v53, %s3544_s8 }
 0xdad   :  { %v1397_v54 = vpop.permute.xlu1 %1396 }
 0xdae   :  { %1399 = vst.msk [vmem:[#allocation5 + $0x6] sm:$0x3] %vm562_vm6, %v1397_v54  ;;  %3175 = vmatmul.mubr.msk.f32.vlgmr.msra.gmra.mxu0 %vm279_vm3, %v1397_v54 }
 0xdaf   :  { %3189 = vmatpush3.msra.mxu0 %v3742_v33  ;;  %3196 = vmatprep.mubr.msk.f32.mxu0 %vm3542_vm2, %v3541_v4 }
 0xdb0   :  { %3190 = vmatprep.subr.mxu0 %v3541_v4 }
 0xdb1   :  { %3191 = vmatpush3.msra.mxu0 %v3759_v36 }
 0xdb2   :  { %3192 = vmatprep.subr.mxu0 %v3541_v4 }
 0xdb3   :  { %v1499_v55 = vpop.permute.xlu0 %1498  ;;  %3193 = vmatpush3.msra.mxu0 %v3767_v37 }
 0xdb4   :  { %1671 = vst.msk [vmem:[#allocation4 + $0x8] sm:$0x3] %vm562_vm6, %v1499_v55  ;;  %3164 = vmatmul.mubr.msk.f32.vlgmr.msra.gmra.mxu1 %vm279_vm3, %v1499_v55  ;;  %3194 = vmatprep.subr.mxu0 %v3541_v4 }
 0xdb5   :  { %3178 = vmatpush3.msra.mxu1 %v3683_v3  ;;  %3185 = vmatprep.mubr.msk.f32.mxu1 %vm3542_vm2, %v3541_v4 }
 0xdb6   :  { %3179 = vmatprep.subr.mxu1 %v3541_v4  ;;  %3195 = vmatpush3.msra.mxu0 %v3781_v39 }
 0xdb7   :  { %3180 = vmatpush3.msra.mxu1 %v3690_v5  ;;  %3210 = vmatprep.subr.mxu0 %v3541_v4 }
 0xdb8   :  { %3181 = vmatprep.subr.mxu1 %v3541_v4 }
 0xdb9   :  { %3182 = vmatpush3.msra.mxu1 %v3699_v6  ;;  %v1496_v6 = vld [vmem:[#allocation3 + $0x8] sm:$0x3] }
 0xdba   :  { %3183 = vmatprep.subr.mxu1 %v3541_v4 }
 0xdbb   :  { %3184 = vmatpush3.msra.mxu1 %v3706_v7 }
 0xdbc   :  { %3186 = vmatmul.mubr.msk.f32.vlgmr.msra.gmra.mxu1 %vm279_vm3, %v1499_v55  ;;  %3199 = vmatprep.subr.mxu1 %v3541_v4 }
 0xdbd   :  { %3200 = vmatpush3.msra.mxu1 %v3747_v34  ;;  %3207 = vmatprep.mubr.msk.f32.mxu1 %vm3542_vm2, %v3541_v4 }
 0xdbe   :  { %3201 = vmatprep.subr.mxu1 %v3541_v4 }
 0xdbf   :  { %3202 = vmatpush3.msra.mxu1 %v3753_v35 }
 0xdc0   :  { %3203 = vmatprep.subr.mxu1 %v3541_v4 }
 0xdc1   :  { %3204 = vmatpush3.msra.mxu1 %v3773_v38 }
 0xdc2   :  { %3205 = vmatprep.subr.mxu1 %v3541_v4 }
 0xdc3   :  { %3206 = vmatpush3.msra.mxu1 %v3795_v41 }
 0xdc4   :  { %3221 = vmatprep.subr.mxu1 %v3541_v4 }
 0xe6e   :  { %v1641_v3 = vpop.f32.mrf.mxu0 }
 0xe70   :  { %v3176_v5 = vpop.f32.mrf.mxu0 }
 0xe74   :  { %v1568_v7 = vpop.f32.mrf.mxu1 }
 0xe75   :  { %v1572_v56 = vadd.f32 %v1568_v7, %v1496_v6 }
 0xe76   :  { %v3165_v57 = vpop.f32.mrf.mxu1 }
 0xe77   :  { %v1645_v58 = vadd.f32 %v1641_v3, %v1572_v56 }
 0xe79   :  { %3379 = vtanh.f32 %v1645_v58  ;;  %v2842_v1 = vmul.f32 -1.442695, %v1645_v58 }
 0xe7c   :  { %v1744_v60 = vpop.f32.mrf.mxu1 }
 0xe7d   :  { %v1748_v61 = vadd.f32 %v1744_v60, %v1677_v59 }
 0xe7e   :  { %v3187_v62 = vpop.f32.mrf.mxu1 }
 0xe7f   :  { %3381 = vtanh.f32 %v1748_v61  ;;  %v2844_v2 = vmul.f32 -1.442695, %v1748_v61 }
 0xe80   :  { %3383 = vpow2.f32 %v2842_v1 }
 0xe81   :  { %3385 = vpow2.f32 %v2844_v2 }
 0xe86   :  { %v3380_v63 = vpop.eup %3379 }
 0xe87   :  { %1655 = vrot.lane.b32.xlu1 %v3380_v63, %s3543_s2 }
 0xe8c   :  { %v3382_v0 = vpop.eup %3381 }
 0xe8d   :  { %1758 = vrot.lane.b32.xlu0 %v3382_v0, %s3543_s2  ;;  %v3384_v8 = vpop.eup %3383 }
 0xe8e   :  { %v1649_v9 = vadd.f32 1.0, %v3384_v8  ;;  %v3386_v10 = vpop.eup %3385 }
 0xe8f   :  { %v1752_v11 = vadd.f32 1.0, %v3386_v10 }
 0xe90   :  { %3387 = vrcp.f32 %v1649_v9 }
 0xe91   :  { %3389 = vrcp.f32 %v1752_v11  ;;  %v3447_v11 = vld [vmem:[%s4296_s10 + $0x18] sm:$0xff] }
 0xe9d   :  { %v3388_v12 = vpop.eup %3387 }
 0xe9e   :  { %v3390_v15 = vpop.eup %3389  ;;  %v1652_v18 = vmul.f32 %v3388_v12, %v4001_v44 }
 0xe9f   :  { %v1755_v21 = vmul.f32 %v3390_v15, %v4005_v47 }
 0xef9   :  { %v1656_v13 = vpop.permute.xlu1 %1655 }
 0xefa   :  { %v1658_v14 = vmul.f32 %v3388_v12, %v1656_v13 }
 0xefc   :  { %1660 = vrot.lane.b32.xlu1 %v1658_v14, %s3544_s8  ;;  %v3449_v14 = vld [vmem:[%s4296_s10 + $0x8] sm:$0xff] }
 0xeff   :  { %v1759_v16 = vpop.permute.xlu0 %1758 }
 0xf00   :  { %v1761_v17 = vmul.f32 %v3390_v15, %v1759_v16  ;;  %v3451_v16 = vld [vmem:[%s4297_s11 + $0x18] sm:$0xff] }
 0xf02   :  { %1763 = vrot.lane.b32.xlu0 %v1761_v17, %s3544_s8  ;;  %v3452_v17 = vld [vmem:[%s4297_s11 + $0x10] sm:$0xff] }
 0xf6e   :  { %v1661_v19 = vpop.permute.xlu1 %1660 }
 0xf6f   :  { %v4052_v20 = vadd.f32 %v1661_v19, %v1652_v18  ;;  %v3453_v18 = vld [vmem:[%s4297_s11 + $0x8] sm:$0xff]  ;;  %v3454_v19 = vld [vmem:[%s4297_s11] sm:$0xff] }
 0xf71   :  { %3391 = vtanh.f32 %v4052_v20 }
 0xf74   :  { %v1764_v22 = vpop.permute.xlu0 %1763 }
 0xf75   :  { %v4056_v23 = vadd.f32 %v1764_v22, %v1755_v21  ;;  %v2050_v22 = vld [vmem:[#allocation3 + $0xc] sm:$0x3] }
 0xf77   :  { %3393 = vtanh.f32 %v4056_v23 }
 0xf7e   :  { %v3392_v24 = vpop.eup %3391 }
 0xf7f   :  { %1666 = vrot.lane.b32.xlu1 %v3392_v24, %s3543_s2 }
 0xf84   :  { %v3394_v25 = vpop.eup %3393 }
 0xf85   :  { %1769 = vrot.lane.b32.xlu0 %v3394_v25, %s3543_s2 }
 0xff1   :  { %v1667_v26 = vpop.permute.xlu1 %1666 }
 0xff2   :  { %v1669_v27 = vmul.f32 %v3388_v12, %v1667_v26  ;;  %v3448_v12 = vld [vmem:[%s4296_s10 + $0x10] sm:$0xff] }
 0xff4   :  { %1673 = vrot.lane.b32.xlu1 %v1669_v27, %s3544_s8  ;;  %v2231_v27 = vld [vmem:[#allocation2 + $0xe] sm:$0x3] }
 0xff7   :  { %v1770_v28 = vpop.permute.xlu0 %1769 }
 0xff8   :  { %v1772_v29 = vmul.f32 %v3390_v15, %v1770_v28  ;;  %v3450_v15 = vld [vmem:[%s4296_s10] sm:$0xff] }
 0xffa   :  { %1775 = vrot.lane.b32.xlu0 %v1772_v29, %s3544_s8 }
0x1066   :  { %v1674_v30 = vpop.permute.xlu1 %1673 }
0x1067   :  { %1676 = vst.msk [vmem:[#allocation5 + $0x8] sm:$0x3] %vm562_vm6, %v1674_v30  ;;  %3208 = vmatmul.mubr.msk.f32.vlgmr.msra.gmra.mxu1 %vm279_vm3, %v1674_v30 }
0x1068   :  { %3222 = vmatpush3.msra.mxu1 %v3742_v33  ;;  %3229 = vmatprep.mubr.msk.f32.mxu1 %vm3542_vm2, %v3541_v4  ;;  %v4078_v33 = vld [vmem:[%s4323_s7 + $0x18] sm:$0xff] }
0x1069   :  { %3223 = vmatprep.subr.mxu1 %v3541_v4 }
0x106a   :  { %3224 = vmatpush3.msra.mxu1 %v3759_v36  ;;  %v4088_v36 = vld [vmem:[%s4323_s7 + $0x10] sm:$0xff] }
0x106b   :  { %3225 = vmatprep.subr.mxu1 %v3541_v4 }
0x106c   :  { %v1776_v31 = vpop.permute.xlu0 %1775  ;;  %3226 = vmatpush3.msra.mxu1 %v3767_v37  ;;  %v4096_v37 = vld [vmem:[%s4323_s7 + $0x8] sm:$0xff] }
0x106d   :  { %1948 = vst.msk [vmem:[#allocation4 + $0xa] sm:$0x3] %vm562_vm6, %v1776_v31  ;;  %3197 = vmatmul.mubr.msk.f32.vlgmr.msra.gmra.mxu0 %vm279_vm3, %v1776_v31  ;;  %3227 = vmatprep.subr.mxu1 %v3541_v4 }
0x106e   :  { %3211 = vmatpush3.msra.mxu0 %v4078_v33  ;;  %3218 = vmatprep.mubr.msk.f32.mxu0 %vm3542_vm2, %v3541_v4 }
0x106f   :  { %3212 = vmatprep.subr.mxu0 %v3541_v4  ;;  %3228 = vmatpush3.msra.mxu1 %v3781_v39  ;;  %v4103_v39 = vld [vmem:[%s4323_s7] sm:$0xff] }
0x1070   :  { %3213 = vmatpush3.msra.mxu0 %v4088_v36  ;;  %3243 = vmatprep.subr.mxu1 %v3541_v4 }
0x1071   :  { %3214 = vmatprep.subr.mxu0 %v3541_v4 }
0x1072   :  { %3215 = vmatpush3.msra.mxu0 %v4096_v37 }
0x1073   :  { %3216 = vmatprep.subr.mxu0 %v3541_v4 }
0x1074   :  { %3217 = vmatpush3.msra.mxu0 %v4103_v39 }
0x1075   :  { %3219 = vmatmul.mubr.msk.f32.vlgmr.msra.gmra.mxu0 %vm279_vm3, %v1776_v31  ;;  %3232 = vmatprep.subr.mxu0 %v3541_v4 }
0x1076   :  { %3233 = vmatpush3.msra.mxu0 %v3747_v34  ;;  %3240 = vmatprep.mubr.msk.f32.mxu0 %vm3542_vm2, %v3541_v4  ;;  %v1773_v34 = vld [vmem:[#allocation3 + $0xa] sm:$0x3] }
0x1077   :  { %3234 = vmatprep.subr.mxu0 %v3541_v4 }
0x1078   :  { %3235 = vmatpush3.msra.mxu0 %v3753_v35 }
0x1079   :  { %3236 = vmatprep.subr.mxu0 %v3541_v4 }
0x107a   :  { %3237 = vmatpush3.msra.mxu0 %v3773_v38 }
0x107b   :  { %3238 = vmatprep.subr.mxu0 %v3541_v4 }
0x107c   :  { %3239 = vmatpush3.msra.mxu0 %v3795_v41 }
0x107d   :  { %3254 = vmatprep.subr.mxu0 %v3541_v4 }
0x1127   :  { %v1918_v32 = vpop.f32.mrf.mxu1 }
0x1129   :  { %v3209_v40 = vpop.f32.mrf.mxu1 }
0x112d   :  { %v1845_v42 = vpop.f32.mrf.mxu0 }
0x112e   :  { %v1849_v43 = vadd.f32 %v1845_v42, %v1773_v34 }
0x112f   :  { %v3198_v44 = vpop.f32.mrf.mxu0 }
0x1130   :  { %v1922_v45 = vadd.f32 %v1918_v32, %v1849_v43 }
0x1132   :  { %3395 = vtanh.f32 %v1922_v45  ;;  %v2847_v41 = vmul.f32 -1.442695, %v1922_v45 }
0x1135   :  { %v2021_v35 = vpop.f32.mrf.mxu0 }
0x1136   :  { %v2025_v47 = vadd.f32 %v2021_v35, %v1954_v46 }
0x1137   :  { %v3220_v48 = vpop.f32.mrf.mxu0 }
0x1138   :  { %3397 = vtanh.f32 %v2025_v47  ;;  %v2849_v50 = vmul.f32 -1.442695, %v2025_v47 }
0x1139   :  { %3399 = vpow2.f32 %v2847_v41 }
0x113a   :  { %3401 = vpow2.f32 %v2849_v50 }
0x113f   :  { %v3396_v38 = vpop.eup %3395 }
0x1140   :  { %1932 = vrot.lane.b32.xlu1 %v3396_v38, %s3543_s2 }
0x1145   :  { %v3398_v49 = vpop.eup %3397 }
0x1146   :  { %2035 = vrot.lane.b32.xlu0 %v3398_v49, %s3543_s2  ;;  %v3400_v51 = vpop.eup %3399 }
0x1147   :  { %v1926_v52 = vadd.f32 1.0, %v3400_v51  ;;  %v3402_v53 = vpop.eup %3401 }
0x1148   :  { %v2029_v54 = vadd.f32 1.0, %v3402_v53 }
0x1149   :  { %3403 = vrcp.f32 %v1926_v52  ;;  %v2525_v52 = vld [vmem:[%s4299_s13 + $0x18] sm:$0xff] }
0x114a   :  { %3405 = vrcp.f32 %v2029_v54 }
0x1156   :  { %v3404_v55 = vpop.eup %3403 }
0x1157   :  { %v3406_v6 = vpop.eup %3405  ;;  %v1929_v57 = vmul.f32 %v3404_v55, %v4052_v20 }
0x1158   :  { %v2032_v60 = vmul.f32 %v3406_v6, %v4056_v23 }
0x11b2   :  { %v1933_v3 = vpop.permute.xlu1 %1932 }
0x11b3   :  { %v1935_v5 = vmul.f32 %v3404_v55, %v1933_v3 }
0x11b5   :  { %1937 = vrot.lane.b32.xlu1 %v1935_v5, %s3544_s8 }
0x11b8   :  { %v2036_v7 = vpop.permute.xlu0 %2035 }
0x11b9   :  { %v2038_v56 = vmul.f32 %v3406_v6, %v2036_v7 }
0x11bb   :  { %2040 = vrot.lane.b32.xlu0 %v2038_v56, %s3544_s8  ;;  %v2524_v56 = vld [vmem:[%s4299_s13 + $0x10] sm:$0xff] }
0x1227   :  { %v1938_v58 = vpop.permute.xlu1 %1937 }
0x1228   :  { %v4123_v59 = vadd.f32 %v1938_v58, %v1929_v57  ;;  %v2520_v57 = vld [vmem:[#allocation4] sm:$0xff]  ;;  %v2523_v58 = vld [vmem:[%s4299_s13 + $0x8] sm:$0xff] }
0x122a   :  { %3407 = vtanh.f32 %v4123_v59 }
0x122d   :  { %v2041_v61 = vpop.permute.xlu0 %2040 }
0x122e   :  { %v4127_v62 = vadd.f32 %v2041_v61, %v2032_v60 }
0x1230   :  { %3409 = vtanh.f32 %v4127_v62 }
0x1237   :  { %v3408_v63 = vpop.eup %3407 }
0x1238   :  { %1943 = vrot.lane.b32.xlu1 %v3408_v63, %s3543_s2  ;;  %v2327_v63 = vld [vmem:[#allocation3 + $0xe] sm:$0x3] }
0x123d   :  { %v3410_v0 = vpop.eup %3409 }
0x123e   :  { %2046 = vrot.lane.b32.xlu0 %v3410_v0, %s3543_s2 }
0x12aa   :  { %v1944_v1 = vpop.permute.xlu1 %1943 }
0x12ab   :  { %v1946_v2 = vmul.f32 %v3404_v55, %v1944_v1 }
0x12ad   :  { %1950 = vrot.lane.b32.xlu1 %v1946_v2, %s3544_s8 }
0x12b0   :  { %v2047_v8 = vpop.permute.xlu0 %2046 }
0x12b1   :  { %v2049_v9 = vmul.f32 %v3406_v6, %v2047_v8  ;;  %v2616_v6 = vld [vmem:[#allocation5] sm:$0xff] }
0x12b3   :  { %2052 = vrot.lane.b32.xlu0 %v2049_v9, %s3544_s8  ;;  %v2858_v9 = vld [vmem:[%s4300_s14] ss:$0 sm:$0xff] }
0x131f   :  { %v1951_v10 = vpop.permute.xlu1 %1950 }
0x1320   :  { %1953 = vst.msk [vmem:[#allocation5 + $0xa] sm:$0x3] %vm562_vm6, %v1951_v10  ;;  %3241 = vmatmul.mubr.msk.f32.vlgmr.msra.gmra.mxu0 %vm279_vm3, %v1951_v10 }
0x1321   :  { %3255 = vmatpush3.msra.mxu0 %v3447_v11  ;;  %3262 = vmatprep.mubr.msk.f32.mxu0 %vm3542_vm2, %v3541_v4 }
0x1322   :  { %3256 = vmatprep.subr.mxu0 %v3541_v4 }
0x1323   :  { %3257 = vmatpush3.msra.mxu0 %v3448_v12 }
0x1324   :  { %3258 = vmatprep.subr.mxu0 %v3541_v4 }
0x1325   :  { %v2053_v13 = vpop.permute.xlu0 %2052  ;;  %3259 = vmatpush3.msra.mxu0 %v3449_v14 }
0x1326   :  { %2225 = vst.msk [vmem:[#allocation4 + $0xc] sm:$0x3] %vm562_vm6, %v2053_v13  ;;  %3230 = vmatmul.mubr.msk.f32.vlgmr.msra.gmra.mxu1 %vm279_vm3, %v2053_v13  ;;  %3260 = vmatprep.subr.mxu0 %v3541_v4 }
0x1327   :  { %3244 = vmatpush3.msra.mxu1 %v4078_v33  ;;  %3251 = vmatprep.mubr.msk.f32.mxu1 %vm3542_vm2, %v3541_v4 }
0x1328   :  { %3245 = vmatprep.subr.mxu1 %v3541_v4  ;;  %3261 = vmatpush3.msra.mxu0 %v3450_v15 }
0x1329   :  { %3246 = vmatpush3.msra.mxu1 %v4088_v36  ;;  %3276 = vmatprep.subr.mxu0 %v2525_v52 }
0x132a   :  { %3247 = vmatprep.subr.mxu1 %v3541_v4 }
0x132b   :  { %3248 = vmatpush3.msra.mxu1 %v4096_v37 }
0x132c   :  { %3249 = vmatprep.subr.mxu1 %v3541_v4 }
0x132d   :  { %3250 = vmatpush3.msra.mxu1 %v4103_v39 }
0x132e   :  { %3252 = vmatmul.mubr.msk.f32.vlgmr.msra.gmra.mxu1 %vm279_vm3, %v2053_v13  ;;  %3265 = vmatprep.subr.mxu1 %v3541_v4 }
0x132f   :  { %3266 = vmatpush3.msra.mxu1 %v3451_v16  ;;  %3273 = vmatprep.mubr.msk.f32.mxu1 %vm3542_vm2, %v3541_v4 }
0x1330   :  { %3267 = vmatprep.subr.mxu1 %v3541_v4 }
0x1331   :  { %3268 = vmatpush3.msra.mxu1 %v3452_v17 }
0x1332   :  { %3269 = vmatprep.subr.mxu1 %v3541_v4 }
0x1333   :  { %3270 = vmatpush3.msra.mxu1 %v3453_v18 }
0x1334   :  { %3271 = vmatprep.subr.mxu1 %v3541_v4 }
0x1335   :  { %3272 = vmatpush3.msra.mxu1 %v3454_v19 }
0x13e0   :  { %v2195_v20 = vpop.f32.mrf.mxu0 }
0x13e2   :  { %v3242_v21 = vpop.f32.mrf.mxu0 }
0x13e6   :  { %v2122_v23 = vpop.f32.mrf.mxu1 }
0x13e7   :  { %v2126_v24 = vadd.f32 %v2122_v23, %v2050_v22 }
0x13e8   :  { %v3231_v25 = vpop.f32.mrf.mxu1 }
0x13e9   :  { %v2199_v26 = vadd.f32 %v2195_v20, %v2126_v24  ;;  %v2621_v25 = vld [vmem:[%s4301_s15 + $0x18] sm:$0xff] }
0x13ea   :  { %3287 = vmatprep.subr.mxu1 %v2621_v25 }
0x13eb   :  { %3411 = vtanh.f32 %v2199_v26  ;;  %v2852_v33 = vmul.f32 -1.442695, %v2199_v26  ;;  %v2620_v26 = vld [vmem:[%s4301_s15 + $0x10] sm:$0xff] }
0x13ee   :  { %v2298_v28 = vpop.f32.mrf.mxu1 }
0x13ef   :  { %v2302_v29 = vadd.f32 %v2298_v28, %v2231_v27  ;;  %v2619_v27 = vld [vmem:[%s4301_s15 + $0x8] sm:$0xff]  ;;  %v2618_v28 = vld [vmem:[%s4301_s15] sm:$0xff] }
0x13f0   :  { %v3253_v30 = vpop.f32.mrf.mxu1 }
0x13f1   :  { %3413 = vtanh.f32 %v2302_v29  ;;  %v2854_v36 = vmul.f32 -1.442695, %v2302_v29 }
0x13f2   :  { %3415 = vpow2.f32 %v2852_v33  ;;  %v2713_v33 = vlaneseq }
0x13f3   :  { %3417 = vpow2.f32 %v2854_v36 }
0x13f4   :  { %v2714_v36 = vand.u32 127, %v2713_v33 }
0x13f6   :  { %vm2715_vm8 = vcmp.eq.s32.totalorder %v2714_v36, 2 }
0x13f8   :  { %v3412_v31 = vpop.eup %3411 }
0x13f9   :  { %2209 = vrot.lane.b32.xlu1 %v3412_v31, %s3543_s2 }
0x13fe   :  { %v3414_v4 = vpop.eup %3413 }
0x13ff   :  { %2312 = vrot.lane.b32.xlu0 %v3414_v4, %s3543_s2  ;;  %v3416_v37 = vpop.eup %3415 }
0x1400   :  { %v2203_v39 = vadd.f32 1.0, %v3416_v37  ;;  %v3418_v32 = vpop.eup %3417  ;;  %v2861_v37 = vld [vmem:[%s4302_s16] ss:$0 sm:$0xff]  ;;  %s3545_s16 = smov 96  }
0x1401   :  { %v2306_v40 = vadd.f32 1.0, %v3418_v32 }
0x1402   :  { %3419 = vrcp.f32 %v2203_v39 }
0x1403   :  { %3421 = vrcp.f32 %v2306_v40 }
0x140f   :  { %v3420_v34 = vpop.eup %3419 }
0x1410   :  { %v3422_v44 = vpop.eup %3421  ;;  %v2206_v35 = vmul.f32 %v3420_v34, %v4123_v59  ;;  %v2522_v59 = vld [vmem:[%s4299_s13] sm:$0xff] }
0x1411   :  { %v2309_v38 = vmul.f32 %v3422_v44, %v4127_v62 }
0x146b   :  { %v2210_v42 = vpop.permute.xlu1 %2209 }
0x146c   :  { %v2212_v43 = vmul.f32 %v3420_v34, %v2210_v42 }
0x146e   :  { %2214 = vrot.lane.b32.xlu1 %v2212_v43, %s3544_s8 }
0x1471   :  { %v2313_v45 = vpop.permute.xlu0 %2312 }
0x1472   :  { %v2315_v46 = vmul.f32 %v3422_v44, %v2313_v45 }
0x1474   :  { %2317 = vrot.lane.b32.xlu0 %v2315_v46, %s3544_s8 }
0x14e0   :  { %v2215_v47 = vpop.permute.xlu1 %2214 }
0x14e1   :  { %v4188_v48 = vadd.f32 %v2215_v47, %v2206_v35 }
0x14e3   :  { %3423 = vtanh.f32 %v4188_v48 }
0x14e6   :  { %v2318_v49 = vpop.permute.xlu0 %2317 }
0x14e7   :  { %v4192_v41 = vadd.f32 %v2318_v49, %v2309_v38 }
0x14e9   :  { %3425 = vtanh.f32 %v4192_v41 }
0x14f0   :  { %v3424_v50 = vpop.eup %3423 }
0x14f1   :  { %2220 = vrot.lane.b32.xlu1 %v3424_v50, %s3543_s2 }
0x14f6   :  { %v3426_v51 = vpop.eup %3425 }
0x14f7   :  { %2323 = vrot.lane.b32.xlu0 %v3426_v51, %s3543_s2 }
0x1563   :  { %v2221_v53 = vpop.permute.xlu1 %2220 }
0x1564   :  { %v2223_v54 = vmul.f32 %v3420_v34, %v2221_v53 }
0x1566   :  { %2227 = vrot.lane.b32.xlu1 %v2223_v54, %s3544_s8 }
0x1569   :  { %v2324_v55 = vpop.permute.xlu0 %2323 }
0x156a   :  { %v2326_v3 = vmul.f32 %v3422_v44, %v2324_v55 }
0x156c   :  { %2329 = vrot.lane.b32.xlu0 %v2326_v3, %s3544_s8 }
0x15d8   :  { %v2228_v5 = vpop.permute.xlu1 %2227 }
0x15d9   :  { %2230 = vst.msk [vmem:[#allocation5 + $0xc] sm:$0x3] %vm562_vm6, %v2228_v5  ;;  %3274 = vmatmul.mubr.msk.f32.vlgmr.msra.gmra.mxu1 %vm279_vm3, %v2228_v5 }
0x15da   :  { %3295 = vmatprep.mubr.msk.f32.mxu1 %vm279_vm3, %v2616_v6  ;;  %3288 = vmatpush3.msra.mxu1 %v2621_v25 }
0x15db   :  { %3289 = vmatprep.subr.mxu1 %v2620_v26 }
0x15dc   :  { %3290 = vmatpush3.msra.mxu1 %v2620_v26 }
0x15dd   :  { %3291 = vmatprep.subr.mxu1 %v2619_v27 }
0x15de   :  { %v2330_v7 = vpop.permute.xlu0 %2329  ;;  %3292 = vmatpush3.msra.mxu1 %v2619_v27 }
0x15df   :  { %2502 = vst.msk [vmem:[#allocation4 + $0xe] sm:$0x3] %vm562_vm6, %v2330_v7  ;;  %2508 = vst.msk [vmem:[#allocation6] sm:$0x3] %vm562_vm6, %v2330_v7  ;;  %3263 = vmatmul.mubr.msk.f32.vlgmr.msra.gmra.mxu0 %vm279_vm3, %v2330_v7  ;;  %3293 = vmatprep.subr.mxu1 %v2618_v28 }
0x15e0   :  { %3277 = vmatpush3.msra.mxu0 %v2525_v52  ;;  %3284 = vmatprep.mubr.msk.f32.mxu0 %vm279_vm3, %v2520_v57 }
0x15e1   :  { %3278 = vmatprep.subr.mxu0 %v2524_v56  ;;  %3294 = vmatpush3.msra.mxu1 %v2618_v28 }
0x15e2   :  { %3279 = vmatpush3.msra.mxu0 %v2524_v56 }
0x15e3   :  { %3280 = vmatprep.subr.mxu0 %v2523_v58 }
0x15e4   :  { %3281 = vmatpush3.msra.mxu0 %v2523_v58 }
0x15e5   :  { %3282 = vmatprep.subr.mxu0 %v2522_v59 }
0x15e6   :  { %3283 = vmatpush3.msra.mxu0 %v2522_v59  ;;  %v2521_v60 = vld [vmem:[#allocation4 + $0x8] sm:$0xff] }
0x15e7   :  { %3285 = vmatmul.mubr.msk.f32.vlgmr.msra.gmra.mxu0 %vm279_vm3, %v2521_v60 }
0x1699   :  { %v2472_v61 = vpop.f32.mrf.mxu1 }
0x169b   :  { %v3275_v62 = vpop.f32.mrf.mxu1 }
0x169f   :  { %v2399_v0 = vpop.f32.mrf.mxu0 }
0x16a0   :  { %v2403_v1 = vadd.f32 %v2399_v0, %v2327_v63 }
0x16a1   :  { %v3264_v2 = vpop.f32.mrf.mxu0 }
0x16a2   :  { %v2476_v8 = vadd.f32 %v2472_v61, %v2403_v1 }
0x16a4   :  { %3427 = vtanh.f32 %v2476_v8  ;;  %v2857_v15 = vmul.f32 -1.442695, %v2476_v8 }
0x16a6   :  { %3429 = vpow2.f32 %v2857_v15 }
0x16a7   :  { %v3286_v10 = vpop.f32.mrf.mxu0 }
0x16a8   :  { %v2611_v11 = vadd.f32 %v3286_v10, %v2858_v9 }
0x16a9   :  { %v2605_v12 = vpop.f32.mrf.mxu0 }
0x16aa   :  { %2615 = vst.msk [vmem:[%s4303_s17 + $0x8] sm:$0xff] %vm76_vm1, %v2611_v11  ;;  %v2606_v13 = vadd.f32 %v2858_v9, %v2605_v12 }
0x16ac   :  { %2614 = vst.msk [vmem:[%s4303_s17] sm:$0xff] %vm76_vm1, %v2606_v13 }
0x16b1   :  { %v3428_v14 = vpop.eup %3427 }
0x16b2   :  { %2486 = vrot.lane.b32.xlu0 %v3428_v14, %s3543_s2 }
0x16b3   :  { %v3430_v16 = vpop.eup %3429 }
0x16b4   :  { %v2480_v17 = vadd.f32 1.0, %v3430_v16 }
0x16b6   :  { %3431 = vrcp.f32 %v2480_v17 }
0x16c3   :  { %v3432_v18 = vpop.eup %3431 }
0x16c4   :  { %v2483_v21 = vmul.f32 %v3432_v18, %v4188_v48 }
0x1724   :  { %v2487_v19 = vpop.permute.xlu0 %2486 }
0x1725   :  { %v2489_v20 = vmul.f32 %v3432_v18, %v2487_v19 }
0x1727   :  { %2491 = vrot.lane.b32.xlu1 %v2489_v20, %s3544_s8 }
0x1799   :  { %v2492_v22 = vpop.permute.xlu1 %2491 }
0x179a   :  { %v2494_v23 = vadd.f32 %v2492_v22, %v2483_v21 }
0x179c   :  { %3433 = vtanh.f32 %v2494_v23 }
0x17a9   :  { %v3434_v24 = vpop.eup %3433 }
0x17aa   :  { %2497 = vrot.lane.b32.xlu0 %v3434_v24, %s3543_s2 }
0x181c   :  { %v2498_v29 = vpop.permute.xlu0 %2497 }
0x181d   :  { %v2500_v30 = vmul.f32 %v3432_v18, %v2498_v29 }
0x181f   :  { %2504 = vrot.lane.b32.xlu1 %v2500_v30, %s3544_s8 }
0x1891   :  { %v2505_v31 = vpop.permute.xlu1 %2504 }
0x1892   :  { %2507 = vst.msk [vmem:[#allocation5 + $0xe] sm:$0x3] %vm562_vm6, %v2505_v31  ;;  %2514 = vst.msk [vmem:[#allocation10] sm:$0x3] %vm562_vm6, %v2505_v31 }
0x1899   :  { %v2617_v4 = vld [vmem:[#allocation5 + $0x8] sm:$0xff] }
0x189a   :  { %3296 = vmatmul.mubr.msk.f32.vlgmr.msra.gmra.mxu1 %vm279_vm3, %v2617_v4 }
0x195a   :  { %v3297_v39 = vpop.f32.mrf.mxu1 }
0x195b   :  { %v2707_v32 = vadd.f32 %v3297_v39, %v2861_v37 }
0x195c   :  { %v2701_v40 = vpop.f32.mrf.mxu1 }
0x195d   :  { %2712 = vst.msk [vmem:[%s4304_s18 + $0x8] sm:$0xff] %vm2710_vm7, %v2707_v32  ;;  %v2702_v34 = vadd.f32 %v2861_v37, %v2701_v40  ;;  %v2717_v42 = vsel %vm2715_vm8, -1000.0, %v2707_v32 }
0x195e   :  { %v2722_v43 = vsel %vm2718_vm9, %v2717_v42, -inf }
0x195f   :  { %2711 = vst.msk [vmem:[%s4304_s18] sm:$0xff] %vm2710_vm7, %v2702_v34  ;;  %2723 = vmax.xlane.f32.xlu1 %v2722_v43  ;;  %v2716_v44 = vsel %vm2715_vm8, -1000.0, %v2702_v34  ;;  %s3546_s18 = smov [#allocation8]  }
0x1960   :  { %v2719_v45 = vsel %vm2718_vm9, %v2716_v44, -inf  ;;  %s2765_s9 = sshll.u32 %s3546_s18, 4  ;;  %s2766_s9 = int_to_ptr.vmem [resolvable:$true] %s2765_s9 }
0x1961   :  { %2720 = vmax.xlane.f32.xlu0 %v2719_v45  ;;  %s3455_s12 = scalar_lea.vmem %s2766_s9, 32  ;;  %p3460_p1 = scmp.lt.s32.totalorder %s2766_s9, %s2766_s9 }
0x1962   :  { %p3456_p0 = scmp.ne.s32.totalorder %s2766_s9, %s3455_s12  ;;  %p3461_p2 = scmp.lt.s32.totalorder %s3455_s12, %s3455_s12 }
0x1964   :  { %p3462_p3 = por %p3461_p2, %p3460_p1 }
0x1966   :  { %p3463_p4 = pnand %p3462_p3, %p3456_p0 }
0x1970   :  { %2510 = vrot.lane.b32.xlu1 %v4192_v41, %s3545_s16 }
0x19e8   :  { %v2724_v46 = vpop.xlane.xlu1 %2723 }
0x19e9   :  { %v2726_v35 = vsub.f32 %v2717_v42, %v2724_v46 }
0x19ea   :  { %v2721_v47 = vpop.xlane.xlu0 %2720 }
0x19eb   :  { %v2729_v48 = vmul.f32 1.442695, %v2726_v35  ;;  %v2725_v38 = vsub.f32 %v2716_v44, %v2721_v47 }
0x19ec   :  { %v2511_v49 = vpop.permute.xlu1 %2510 }
0x19ed   :  { %3435 = vpow2.f32 %v2729_v48  ;;  %v2727_v50 = vmul.f32 1.442695, %v2725_v38  ;;  %2513 = vst.msk [vmem:[#allocation8] sm:$0x3] %vm562_vm6, %v2511_v49 }
0x19ef   :  { %3437 = vpow2.f32 %v2727_v50 }
0x19fa   :  { %v3436_v51 = vpop.eup %3435 }
0x19fb   :  { %v2734_v52 = vsel %vm2718_vm9, %v3436_v51, 0.0 }
0x19fc   :  { %v3438_v53 = vpop.eup %3437  ;;  %2735 = vadd.xlane.f32.xlu0 %v2734_v52 }
0x19fd   :  { %v2731_v54 = vsel %vm2718_vm9, %v3438_v53, 0.0 }
0x1a00   :  { %2732 = vadd.xlane.f32.xlu0 %v2731_v54 }
0x1a16   :  { %2516 = vrot.lane.b32.xlu0 %v2494_v23, %s3545_s16 }
0x1a17   :  { %3466 = shalt.err (!%p3463_p4)
}
0x1a18   :  { %2768 = dma.vmem_to_hbm [thread:$0]  %s2766_s9, 32, %s4307_s21, [#allocation9]  }
0x1a19   :  { %s3475_s13 = scalar_lea.vmem %s2756_s28, 32  ;;  %p3480_p6 = scmp.lt.s32.totalorder %s2756_s28, %s2756_s28 }
0x1a1a   :  { %p3476_p5 = scmp.ne.s32.totalorder %s2756_s28, %s3475_s13  ;;  %p3481_p7 = scmp.lt.s32.totalorder %s3475_s13, %s3475_s13 }
0x1a1c   :  { %p3482_p8 = por %p3481_p7, %p3480_p6 }
0x1a1e   :  { %p3483_p9 = pnand %p3482_p8, %p3476_p5 }
0x1a20   :  { %3486 = shalt.err (!%p3483_p9)
}
0x1a21   :  { %2758 = dma.vmem_to_hbm [thread:$0]  %s2756_s28, 32, %s4306_s20, [#allocation7]  }
0x1a22   :  { %s3548_s10 = smov [#allocation10]  }
0x1a23   :  { %s2775_s14 = sshll.u32 %s3548_s10, 4  ;;  %s2776_s14 = int_to_ptr.vmem [resolvable:$true] %s2775_s14 }
0x1a24   :  { %s3495_s17 = scalar_lea.vmem %s2776_s14, 32  ;;  %p3500_p11 = scmp.lt.s32.totalorder %s2776_s14, %s2776_s14 }
0x1a25   :  { %p3496_p10 = scmp.ne.s32.totalorder %s2776_s14, %s3495_s17  ;;  %p3501_p12 = scmp.lt.s32.totalorder %s3495_s17, %s3495_s17 }
0x1a27   :  { %p3502_p13 = por %p3501_p12, %p3500_p11 }
0x1a29   :  { %p3503_p0 = pnand %p3502_p13, %p3496_p10 }
0x1a2b   :  { %3506 = shalt.err (!%p3503_p0)
}
0x1a2c   :  { %2778 = dma.vmem_to_hbm [thread:$0]  %s2776_s14, 32, %s4308_s22, [#allocation9]  }
0x1a2d   :  { %s3549_s24 = smov [#allocation11]  }
0x1a2e   :  { %s2785_s25 = sshll.u32 %s3549_s24, 4  ;;  %s2786_s25 = int_to_ptr.vmem [resolvable:$true] %s2785_s25 }
0x1a2f   :  { %s3515_s20 = scalar_lea.vmem %s2786_s25, 32  ;;  %p3520_p2 = scmp.lt.s32.totalorder %s2786_s25, %s2786_s25 }
0x1a30   :  { %p3516_p1 = scmp.ne.s32.totalorder %s2786_s25, %s3515_s20  ;;  %p3521_p3 = scmp.lt.s32.totalorder %s3515_s20, %s3515_s20 }
0x1a32   :  { %p3522_p4 = por %p3521_p3, %p3520_p2 }
0x1a34   :  { %p3523_p5 = pnand %p3522_p4, %p3516_p1 }
0x1a85   :  { %v2736_v41 = vpop.xlane.xlu0 %2735 }
0x1a86   :  { %3439 = vrcp.f32 %v2736_v41 }
0x1a89   :  { %v2733_v55 = vpop.xlane.xlu0 %2732 }
0x1a8a   :  { %3441 = vrcp.f32 %v2733_v55 }
0x1a8d   :  { %v2517_v3 = vpop.permute.xlu0 %2516 }
0x1a8e   :  { %2519 = vst.msk [vmem:[#allocation11] sm:$0x3] %vm562_vm6, %v2517_v3 }
0x1a8f   :  { %3526 = shalt.err (!%p3523_p5)
}
0x1a90   :  { %2788 = dma.vmem_to_hbm [thread:$0]  %s2786_s25, 32, %s4309_s23, [#allocation12]  }
0x1a93   :  { %v3440_v5 = vpop.eup %3439 }
0x1a94   :  { %v2740_v6 = vmul.f32 %v3440_v5, %v3436_v51 }
0x1a96   :  { %2742 = vst.msk [vmem:[%s4305_s19 + $0x8] sm:$0xff] %vm2718_vm9, %v2740_v6 }
0x1a97   :  { %v3442_v7 = vpop.eup %3441 }
0x1a98   :  { %v2738_v56 = vmul.f32 %v3442_v7, %v3438_v53 }
0x1a9a   :  { %2741 = vst.msk [vmem:[%s4305_s19] sm:$0xff] %vm2718_vm9, %v2738_v56 }
0x1a9b   :  { %3535 = dma.done.wait [#allocation7], 32  }
0x1a9c   :  { %3536 = vsyncadd [#allocation7], 4294967264 }
0x1a9d   :  { %3537 = dma.done.wait [#allocation9], 64  }
0x1a9e   :  { %3538 = vsyncadd [#allocation9], 4294967232 }
0x1a9f   :  { %3539 = dma.done.wait [#allocation12], 32  }
0x1aa0   :  { %3540 = vsyncadd [#allocation12], 4294967264 }
0x1aa1   :  { %2807 = vsyncpa [#allocation7], 1 }
0x1aa2   :  { %2808 = vsyncpa [#allocation9], 1 }
0x1aa3   :  { %2809 = vsyncpa [#allocation12], 1 }

</bundles_post_ra>
